<compile_context>
chip_gen: v7x
topology: tpu7x:2x2x1
jax: 0.10.0
libtpu: 0.0.40
codegen_flags: <defaults>
</compile_context>

<pallas_src>
import functools
import math

import jax
import jax.numpy as jnp
from jax.experimental import pallas as pl
from jax.experimental.pallas import tpu as pltpu

EPS = 1e-6
NEG_INF = -1e9


def _layer_norm(v, gamma, beta):
    # BERT-pytorch LayerNorm: unbiased std, eps added to the std (not var).
    # Exact divide (review): the LN normalizer feeds every downstream matmul.
    mean = jnp.mean(v, axis=-1, keepdims=True)
    var = jnp.sum((v - mean) ** 2, axis=-1, keepdims=True) / (v.shape[-1] - 1)
    return gamma * (v - mean) / (jnp.sqrt(var) + EPS) + beta


def _gelu(x):
    # tanh approximation (as used by BERT-pytorch GELU module)
    return 0.5 * x * (1.0 + jnp.tanh(math.sqrt(2.0 / math.pi) * (x + 0.044715 * x ** 3)))


def enc_block_kernel(
    # scalar prefetch (SMEM)
    lens_ref,             # [B] int32 valid-token counts
    # inputs
    x_ref,                # [S, H]  f32 (full sequence for this batch element)
    wqkv_ref,             # [H, 3H] bf16 (fused Q|K|V)
    bqkv_ref,             # [1, 3H] f32
    wo_ref,               # [H, H]  bf16
    bo_ref,               # [1, H]  f32
    g1_ref, be1_ref,      # [1, H]  f32
    g2_ref, be2_ref,      # [1, H]  f32
    w1_ref,               # [H, F]  bf16
    bf1_ref,              # [1, F]  f32
    w2_ref,               # [F, H]  bf16
    bf2_ref,              # [1, H]  f32
    # output
    o_ref,                # [TQ, H]
    # scratch (persist across the query-tile axis)
    xn_ref,               # [S, H]        bf16: cached LayerNorm(x)
    k_ref,                # [heads, S, dk] bf16: cached K per head
    v_ref,                # [heads, S, dk] bf16: cached V per head
    q_scr,                # [heads, TQ, dk] bf16: head-major Q staging
    ctx_scr,              # [TQ, H]       f32: lane-dense head-concat context
    *, heads, tq,
):
    b = pl.program_id(0)
    qi = pl.program_id(1)
    S, H = x_ref.shape
    dk = H // heads
    inv_sqrt_dk = 1.0 / math.sqrt(dk)
    bf16 = jnp.bfloat16

    # ---- once per sequence: LN(x) cache + K/V projections for all S tokens ----
    @pl.when(qi == 0)
    def _():
        xn_bf = _layer_norm(x_ref[...], g1_ref[...], be1_ref[...]).astype(bf16)
        xn_ref[...] = xn_bf
        kv = jnp.dot(xn_bf, wqkv_ref[:, H:],
                     preferred_element_type=jnp.float32) + bqkv_ref[:, H:]
        k_bf = kv[:, :H].astype(bf16)
        v_bf = kv[:, H:].astype(bf16)
        for h in range(heads):                      # cheap slice-stores, once/seq
            sl = slice(h * dk, (h + 1) * dk)
            k_ref[h] = k_bf[:, sl]
            v_ref[h] = v_bf[:, sl]

    # ---- query tile ----
    q_start = pl.multiple_of(qi * tq, tq)
    x_tile = x_ref[pl.ds(q_start, tq), :]           # f32 [TQ, H] (residual)
    xn_q = xn_ref[pl.ds(q_start, tq), :]            # bf16 [TQ, H] (cached LN)
    q = jnp.dot(xn_q, wqkv_ref[:, :H],
                preferred_element_type=jnp.float32) + bqkv_ref[:, :H]
    q_bf = (q * inv_sqrt_dk).astype(bf16)           # fold 1/sqrt(dk) into q once
    for h in range(heads):                          # head-major staging (stores only)
        q_scr[h] = q_bf[:, h * dk:(h + 1) * dk]

    # additive key-padding bias built from prefetched lengths (no [S,S] DMA)
    col = jax.lax.broadcasted_iota(jnp.int32, (1, 1, S), 2)
    bias = jnp.where(col < lens_ref[b], 0.0, NEG_INF).astype(jnp.float32)

    # all heads in one batched contraction each (MXU streams back-to-back)
    s = jnp.einsum('hqd,hkd->hqk', q_scr[...], k_ref[...],
                   preferred_element_type=jnp.float32) + bias
    m = jnp.max(s, axis=-1, keepdims=True)
    e = jnp.exp(s - m)
    p = e * pl.reciprocal(jnp.sum(e, axis=-1, keepdims=True), approx=True)
    ctx_h = jnp.einsum('hqk,hkd->hqd', p.astype(bf16), v_ref[...],
                       preferred_element_type=jnp.float32)
    for h in range(heads):                          # lane-dense [TQ,H] assembly
        ctx_scr[:, h * dk:(h + 1) * dk] = ctx_h[h]

    attn = jnp.dot(ctx_scr[...].astype(bf16), wo_ref[...],
                   preferred_element_type=jnp.float32) + bo_ref[...]
    x1 = x_tile + attn

    # ---- output sublayer: x1 + FFN(LN(x1)) ----
    # TODO(synk): on v6e/v7x the GELU region could run in bf16 to halve vreg
    # pressure on the [TQ,F] tensor; kept f32 for v5e safety / accuracy.
    xn2 = _layer_norm(x1, g2_ref[...], be2_ref[...])
    h1 = _gelu(jnp.dot(xn2.astype(bf16), w1_ref[...],
                       preferred_element_type=jnp.float32) + bf1_ref[...])
    ff = jnp.dot(h1.astype(bf16), w2_ref[...],
                 preferred_element_type=jnp.float32) + bf2_ref[...]

    o_ref[...] = (x1 + ff).astype(o_ref.dtype)


def _vmem_limit_bytes(S, H, F, tq, heads, dk):
    """Size the scoped VMEM limit from the actual resident set (+ headroom)."""
    bf16, f32 = 2, 4
    weights = bf16 * (H * 3 * H + H * H + H * F + F * H)          # single-buffered
    vectors = f32 * (3 * H + H + 4 * H + F + H)
    x_blk = 2 * f32 * S * H                                       # double-buffered in
    o_blk = 2 * f32 * tq * H                                      # double-buffered out
    scratch = bf16 * (S * H + 2 * heads * S * dk + heads * tq * dk) + f32 * tq * H
    live = f32 * (3 * heads * tq * S + 2 * tq * F + 8 * tq * H + 2 * S * H)
    est = weights + vectors + x_blk + o_blk + scratch + live
    # headroom, clamped below v7x's 64 MiB physical VMEM
    return int(min(max(2 * est, 32 * 1024 * 1024), 60 * 1024 * 1024))


def enc_transformer_block(x, lens, params, *, heads, tq=None,
                          single_buffer_consts=True):
    """x: [B, S, H] f32, lens: [B] int32 (tokens 0..len-1 are attendable)."""
    B, S, H = x.shape
    F = params['w1'].shape[1]
    assert H % heads == 0
    dk = H // heads
    if tq is None:
        # Real default query tile: 128 restores output pipelining and caps the
        # live [heads,TQ,S] scores.  Toy / short sequences use the full S.
        tq = 128 if S % 128 == 0 else S
    assert S % tq == 0
    nq = S // tq

    vmem_limit = _vmem_limit_bytes(S, H, F, tq, heads, dk)

    def build(single_buffered):
        def rep(shape):
            # full-array block, constant block index (weights/biases resident)
            idx = lambda b, qi, lens_ref, _n=len(shape): (0,) * _n
            if single_buffered:
                # Constant blocks gain nothing from double-buffering; Buffered(1)
                # halves their VMEM footprint (key for v7x's 64 MiB).
                return pl.BlockSpec(shape, idx, pipeline_mode=pl.Buffered(1))
            return pl.BlockSpec(shape, idx)

        in_specs = [
            pl.BlockSpec((None, S, H), lambda b, qi, lens_ref: (b, 0, 0)),  # x
            rep((H, 3 * H)),   # wqkv
            rep((1, 3 * H)),   # bqkv
            rep((H, H)),       # wo
            rep((1, H)),       # bo
            rep((1, H)),       # ln1 gamma
            rep((1, H)),       # ln1 beta
            rep((1, H)),       # ln2 gamma
            rep((1, H)),       # ln2 beta
            rep((H, F)),       # w1
            rep((1, F)),       # bf1
            rep((F, H)),       # w2
            rep((1, H)),       # bf2
        ]
        out_specs = pl.BlockSpec((None, tq, H), lambda b, qi, lens_ref: (b, qi, 0))

        grid_spec = pltpu.PrefetchScalarGridSpec(
            num_scalar_prefetch=1,
            grid=(B, nq),
            in_specs=in_specs,
            out_specs=out_specs,
            scratch_shapes=[
                pltpu.VMEM((S, H), jnp.bfloat16),           # LN(x) cache
                pltpu.VMEM((heads, S, dk), jnp.bfloat16),   # K per head
                pltpu.VMEM((heads, S, dk), jnp.bfloat16),   # V per head
                pltpu.VMEM((heads, tq, dk), jnp.bfloat16),  # Q staging
                pltpu.VMEM((tq, H), jnp.float32),           # context assembly
            ],
        )

        return pl.pallas_call(
            functools.partial(enc_block_kernel, heads=heads, tq=tq),
            out_shape=jax.ShapeDtypeStruct((B, S, H), x.dtype),
            grid_spec=grid_spec,
            compiler_params=pltpu.CompilerParams(
                # batch axis parallel (megacore); query-tile axis carries the
                # per-sequence scratch caches so it stays "arbitrary".
                dimension_semantics=("parallel", "arbitrary"),
                vmem_limit_bytes=vmem_limit,
            ),
        )

    args = (lens, x,
            params['wqkv'], params['bqkv'], params['wo'], params['bo'],
            params['g1'], params['be1'], params['g2'], params['be2'],
            params['w1'], params['bf1'], params['w2'], params['bf2'])

    if single_buffer_consts:
        try:
            return build(True)(*args)
        except Exception:
            # pipeline_mode=Buffered(1) unsupported by this jax build; fall back
            # to default double-buffered constant blocks (correctness identical).
            return build(False)(*args)
    return build(False)(*args)


def reference_block(x, mask, params, heads):
    """Plain-JAX f32 reference with identical math (weights upcast to f32)."""
    B, S, H = x.shape
    dk = H // heads

    def ln(v, g, b):
        mean = jnp.mean(v, axis=-1, keepdims=True)
        var = jnp.sum((v - mean) ** 2, axis=-1, keepdims=True) / (v.shape[-1] - 1)
        return g * (v - mean) / (jnp.sqrt(var) + EPS) + b

    wqkv = params['wqkv'].astype(jnp.float32)
    wq, wk, wv = wqkv[:, :H], wqkv[:, H:2 * H], wqkv[:, 2 * H:]
    bqkv = params['bqkv']
    bq, bk, bv = bqkv[:, :H], bqkv[:, H:2 * H], bqkv[:, 2 * H:]
    wo = params['wo'].astype(jnp.float32)
    w1 = params['w1'].astype(jnp.float32)
    w2 = params['w2'].astype(jnp.float32)

    xn = ln(x, params['g1'], params['be1'])

    def split(t):  # [B,S,H] -> [B,heads,S,dk]
        return t.reshape(B, S, heads, dk).transpose(0, 2, 1, 3)

    q = split(xn @ wq + bq)
    k = split(xn @ wk + bk)
    v = split(xn @ wv + bv)
    scores = jnp.einsum('bhqd,bhkd->bhqk', q, k) / math.sqrt(dk)
    scores = jnp.where(mask[:, None, :, :] == 0, NEG_INF, scores)
    p = jax.nn.softmax(scores, axis=-1)
    ctx = jnp.einsum('bhqk,bhkd->bhqd', p, v).transpose(0, 2, 1, 3).reshape(B, S, H)
    attn = ctx @ wo + params['bo']
    x1 = x + attn
    xn2 = ln(x1, params['g2'], params['be2'])
    h1 = _gelu(xn2 @ w1 + params['bf1'])
    ff = h1 @ w2 + params['bf2']
    return x1 + ff


def init_params(key, hidden, heads, d_ff):
    assert hidden % heads == 0
    ks = jax.random.split(key, 12)
    scale = 0.05

    def w(k, shape):
        return scale * jax.random.normal(k, shape, dtype=jnp.float32)

    wq = w(ks[0], (hidden, hidden))
    wk = w(ks[1], (hidden, hidden))
    wv = w(ks[2], (hidden, hidden))
    wo = w(ks[3], (hidden, hidden))
    bq = w(ks[4], (1, hidden))
    bk = w(ks[5], (1, hidden))
    bv = w(ks[6], (1, hidden))

    return dict(
        # fused QKV; MXU operands stored bf16, biases / LN params f32
        wqkv=jnp.concatenate([wq, wk, wv], axis=1).astype(jnp.bfloat16),
        bqkv=jnp.concatenate([bq, bk, bv], axis=1),
        wo=wo.astype(jnp.bfloat16),
        bo=w(ks[7], (1, hidden)),
        g1=jnp.ones((1, hidden), jnp.float32),
        be1=jnp.zeros((1, hidden), jnp.float32),
        g2=jnp.ones((1, hidden), jnp.float32),
        be2=jnp.zeros((1, hidden), jnp.float32),
        w1=w(ks[8], (hidden, d_ff)).astype(jnp.bfloat16),
        bf1=w(ks[9], (1, d_ff)),
        w2=w(ks[10], (d_ff, hidden)).astype(jnp.bfloat16),
        bf2=w(ks[11], (1, hidden)),
    )


if __name__ == "__main__":
    B, S, H = 2, 8, 32
    HEADS, D_FF = 4, 128

    key = jax.random.PRNGKey(0)
    kx, kp = jax.random.split(key)

    x = jax.random.normal(kx, (B, S, H), dtype=jnp.float32)

    # padding info: sequence b attends to the first lens[b] tokens
    lens = jnp.array([8, 5], dtype=jnp.int32)

    params = init_params(kp, H, HEADS, D_FF)

    out = enc_transformer_block(x, lens, params, heads=HEADS)
    out = jax.block_until_ready(out)

    # dense-mask f32 reference (same semantics as the original module's mask)
    token_valid = (jnp.arange(S)[None, :] < lens[:, None]).astype(jnp.float32)
    mask = jnp.broadcast_to(token_valid[:, None, :], (B, S, S))
    ref = reference_block(x, mask, params, HEADS)

    assert out.shape == (B, S, H)
    max_err = float(jnp.max(jnp.abs(out - ref)))
    assert jnp.allclose(out, ref, rtol=2e-2, atol=2e-2), f"mismatch vs reference (max |err|={max_err})"

    # TODO(synk): exact FHE polynomial approximations used by the Enc* layers
    # are not public; plaintext (BERT-pytorch) semantics are implemented.
    print("KERNEL_OK")
</pallas_src>

<mosaic_0001>
module attributes {stable_mosaic.version = 11 : i64} {
  func.func @enc_block_kernel(%arg0: i32, %arg1: i32, %arg2: memref<2xi32, #tpu.memory_space<smem>>, %arg3: memref<1x8x32xf32, #tpu.memory_space<vmem>>, %arg4: memref<32x96xbf16, #tpu.memory_space<vmem>>, %arg5: memref<1x96xf32, #tpu.memory_space<vmem>>, %arg6: memref<32x32xbf16, #tpu.memory_space<vmem>>, %arg7: memref<1x32xf32, #tpu.memory_space<vmem>>, %arg8: memref<1x32xf32, #tpu.memory_space<vmem>>, %arg9: memref<1x32xf32, #tpu.memory_space<vmem>>, %arg10: memref<1x32xf32, #tpu.memory_space<vmem>>, %arg11: memref<1x32xf32, #tpu.memory_space<vmem>>, %arg12: memref<32x128xbf16, #tpu.memory_space<vmem>>, %arg13: memref<1x128xf32, #tpu.memory_space<vmem>>, %arg14: memref<128x32xbf16, #tpu.memory_space<vmem>>, %arg15: memref<1x32xf32, #tpu.memory_space<vmem>>, %arg16: memref<1x8x32xf32, #tpu.memory_space<vmem>>, %arg17: memref<8x32xbf16, #tpu.memory_space<vmem>>, %arg18: memref<4x8x8xbf16, #tpu.memory_space<vmem>>, %arg19: memref<4x8x8xbf16, #tpu.memory_space<vmem>>, %arg20: memref<4x8x8xbf16, #tpu.memory_space<vmem>>, %arg21: memref<8x32xf32, #tpu.memory_space<vmem>>) attributes {dimension_semantics = [#tpu.dimension_semantics<parallel>, #tpu.dimension_semantics<arbitrary>], iteration_bounds = array<i64: 2, 1>, scalar_prefetch = 1 : i64, scratch_operands = 5 : i64, tpu.core_type = #tpu.core_type<tc>, window_params = [{transform_indices = @transform_0, window_bounds = array<i64: 1, 8, 32>}, {pipeline_mode = #tpu.pipeline_mode<synchronous>, transform_indices = @transform_1, window_bounds = array<i64: 32, 96>}, {pipeline_mode = #tpu.pipeline_mode<synchronous>, transform_indices = @transform_2, window_bounds = array<i64: 1, 96>}, {pipeline_mode = #tpu.pipeline_mode<synchronous>, transform_indices = @transform_3, window_bounds = array<i64: 32, 32>}, {pipeline_mode = #tpu.pipeline_mode<synchronous>, transform_indices = @transform_4, window_bounds = array<i64: 1, 32>}, {pipeline_mode = #tpu.pipeline_mode<synchronous>, transform_indices = @transform_5, window_bounds = array<i64: 1, 32>}, {pipeline_mode = #tpu.pipeline_mode<synchronous>, transform_indices = @transform_6, window_bounds = array<i64: 1, 32>}, {pipeline_mode = #tpu.pipeline_mode<synchronous>, transform_indices = @transform_7, window_bounds = array<i64: 1, 32>}, {pipeline_mode = #tpu.pipeline_mode<synchronous>, transform_indices = @transform_8, window_bounds = array<i64: 1, 32>}, {pipeline_mode = #tpu.pipeline_mode<synchronous>, transform_indices = @transform_9, window_bounds = array<i64: 32, 128>}, {pipeline_mode = #tpu.pipeline_mode<synchronous>, transform_indices = @transform_10, window_bounds = array<i64: 1, 128>}, {pipeline_mode = #tpu.pipeline_mode<synchronous>, transform_indices = @transform_11, window_bounds = array<i64: 128, 32>}, {pipeline_mode = #tpu.pipeline_mode<synchronous>, transform_indices = @transform_12, window_bounds = array<i64: 1, 32>}, {transform_indices = @transform_13, window_bounds = array<i64: 1, 8, 32>}]} {
    %c0_i32 = arith.constant 0 : i32
    %0 = arith.cmpi eq, %arg1, %c0_i32 : i32
    %1 = arith.extui %0 : i1 to i32
    %c0_i32_0 = arith.constant 0 : i32
    %2 = arith.cmpi ne, %1, %c0_i32_0 : i32
    scf.if %2 {
      %c0_70 = arith.constant 0 : index
      %c0_71 = arith.constant 0 : index
      %c0_72 = arith.constant 0 : index
      %133 = vector.load %arg3[%c0_70, %c0_71, %c0_72] : memref<1x8x32xf32, #tpu.memory_space<vmem>>, vector<1x8x32xf32>
      %134 = vector.shape_cast %133 : vector<1x8x32xf32> to vector<8x32xf32>
      %c0_73 = arith.constant 0 : index
      %c0_74 = arith.constant 0 : index
      %135 = vector.load %arg8[%c0_73, %c0_74] : memref<1x32xf32, #tpu.memory_space<vmem>>, vector<1x32xf32>
      %c0_75 = arith.constant 0 : index
      %c0_76 = arith.constant 0 : index
      %136 = vector.load %arg9[%c0_75, %c0_76] : memref<1x32xf32, #tpu.memory_space<vmem>>, vector<1x32xf32>
      %cst_77 = arith.constant dense<0.000000e+00> : vector<8xf32>
      %137 = vector.multi_reduction <add>, %134, %cst_77 [1] : vector<8x32xf32> to vector<8xf32>
      %138 = vector.shape_cast %137 : vector<8xf32> to vector<8x1xf32>
      %cst_78 = arith.constant 3.200000e+01 : f32
      %139 = vector.broadcast %cst_78 : f32 to vector<8x1xf32>
      %140 = arith.divf %138, %139 : vector<8x1xf32>
      %141 = vector.broadcast %140 : vector<8x1xf32> to vector<8x32xf32>
      %142 = arith.subf %134, %141 : vector<8x32xf32>
      %143 = arith.mulf %142, %142 : vector<8x32xf32>
      %cst_79 = arith.constant dense<0.000000e+00> : vector<8xf32>
      %144 = vector.multi_reduction <add>, %143, %cst_79 [1] : vector<8x32xf32> to vector<8xf32>
      %145 = vector.shape_cast %144 : vector<8xf32> to vector<8x1xf32>
      %cst_80 = arith.constant 3.100000e+01 : f32
      %146 = vector.broadcast %cst_80 : f32 to vector<8x1xf32>
      %147 = arith.divf %145, %146 : vector<8x1xf32>
      %148 = vector.broadcast %140 : vector<8x1xf32> to vector<8x32xf32>
      %149 = arith.subf %134, %148 : vector<8x32xf32>
      %150 = vector.broadcast %135 : vector<1x32xf32> to vector<8x32xf32>
      %151 = arith.mulf %150, %149 : vector<8x32xf32>
      %152 = math.sqrt %147 : vector<8x1xf32>
      %cst_81 = arith.constant 9.99999997E-7 : f32
      %153 = vector.broadcast %cst_81 : f32 to vector<8x1xf32>
      %154 = arith.addf %152, %153 : vector<8x1xf32>
      %155 = vector.broadcast %154 : vector<8x1xf32> to vector<8x32xf32>
      %156 = arith.divf %151, %155 : vector<8x32xf32>
      %157 = vector.broadcast %136 : vector<1x32xf32> to vector<8x32xf32>
      %158 = arith.addf %156, %157 : vector<8x32xf32>
      %159 = arith.truncf %158 : vector<8x32xf32> to vector<8x32xbf16>
      %c0_82 = arith.constant 0 : index
      %c0_83 = arith.constant 0 : index
      %160 = vector.load %arg17[%c0_82, %c0_83] : memref<8x32xbf16, #tpu.memory_space<vmem>>, vector<8x32xbf16>
      tpu.vector_store %arg17[%c0_82, %c0_83], %159 {strides = array<i32>} : memref<8x32xbf16, #tpu.memory_space<vmem>>, vector<8x32xbf16>,
      %c0_84 = arith.constant 0 : index
      %c32 = arith.constant 32 : index
      %161 = vector.load %arg4[%c0_84, %c32] : memref<32x96xbf16, #tpu.memory_space<vmem>>, vector<32x64xbf16>
      %cst_85 = arith.constant dense<0.000000e+00> : vector<8x64xf32>
      %162 = tpu.matmul %159, %161, %cst_85 {dimension_numbers = #tpu.dot_dimension_numbers<[1], [0], [0], [1], [0, 0, 1, 1], [], []>} : vector<8x32xbf16>, vector<32x64xbf16>, vector<8x64xf32> -> vector<8x64xf32>
      %c0_86 = arith.constant 0 : index
      %c32_87 = arith.constant 32 : index
      %163 = vector.load %arg5[%c0_86, %c32_87] : memref<1x96xf32, #tpu.memory_space<vmem>>, vector<1x64xf32>
      %164 = vector.broadcast %163 : vector<1x64xf32> to vector<8x64xf32>
      %165 = arith.addf %162, %164 : vector<8x64xf32>
      %166 = vector.extract_strided_slice %165 {offsets = [0, 0], sizes = [8, 32], strides = [1, 1]} : vector<8x64xf32> to vector<8x32xf32>
      %167 = arith.truncf %166 : vector<8x32xf32> to vector<8x32xbf16>
      %168 = vector.extract_strided_slice %165 {offsets = [0, 32], sizes = [8, 32], strides = [1, 1]} : vector<8x64xf32> to vector<8x32xf32>
      %169 = arith.truncf %168 : vector<8x32xf32> to vector<8x32xbf16>
      %170 = vector.extract_strided_slice %167 {offsets = [0, 0], sizes = [8, 8], strides = [1, 1]} : vector<8x32xbf16> to vector<8x8xbf16>
      %c0_88 = arith.constant 0 : index
      %c0_89 = arith.constant 0 : index
      %c0_90 = arith.constant 0 : index
      %171 = vector.load %arg18[%c0_88, %c0_89, %c0_90] : memref<4x8x8xbf16, #tpu.memory_space<vmem>>, vector<1x8x8xbf16>
      %172 = vector.shape_cast %171 : vector<1x8x8xbf16> to vector<8x8xbf16>
      %173 = vector.shape_cast %170 : vector<8x8xbf16> to vector<1x8x8xbf16>
      tpu.vector_store %arg18[%c0_88, %c0_89, %c0_90], %173 {strides = array<i32>} : memref<4x8x8xbf16, #tpu.memory_space<vmem>>, vector<1x8x8xbf16>,
      %174 = vector.extract_strided_slice %169 {offsets = [0, 0], sizes = [8, 8], strides = [1, 1]} : vector<8x32xbf16> to vector<8x8xbf16>
      %c0_91 = arith.constant 0 : index
      %c0_92 = arith.constant 0 : index
      %c0_93 = arith.constant 0 : index
      %175 = vector.load %arg19[%c0_91, %c0_92, %c0_93] : memref<4x8x8xbf16, #tpu.memory_space<vmem>>, vector<1x8x8xbf16>
      %176 = vector.shape_cast %175 : vector<1x8x8xbf16> to vector<8x8xbf16>
      %177 = vector.shape_cast %174 : vector<8x8xbf16> to vector<1x8x8xbf16>
      tpu.vector_store %arg19[%c0_91, %c0_92, %c0_93], %177 {strides = array<i32>} : memref<4x8x8xbf16, #tpu.memory_space<vmem>>, vector<1x8x8xbf16>,
      %178 = vector.extract_strided_slice %167 {offsets = [0, 8], sizes = [8, 8], strides = [1, 1]} : vector<8x32xbf16> to vector<8x8xbf16>
      %c1_94 = arith.constant 1 : index
      %c0_95 = arith.constant 0 : index
      %c0_96 = arith.constant 0 : index
      %179 = vector.load %arg18[%c1_94, %c0_95, %c0_96] : memref<4x8x8xbf16, #tpu.memory_space<vmem>>, vector<1x8x8xbf16>
      %180 = vector.shape_cast %179 : vector<1x8x8xbf16> to vector<8x8xbf16>
      %181 = vector.shape_cast %178 : vector<8x8xbf16> to vector<1x8x8xbf16>
      tpu.vector_store %arg18[%c1_94, %c0_95, %c0_96], %181 {strides = array<i32>} : memref<4x8x8xbf16, #tpu.memory_space<vmem>>, vector<1x8x8xbf16>,
      %182 = vector.extract_strided_slice %169 {offsets = [0, 8], sizes = [8, 8], strides = [1, 1]} : vector<8x32xbf16> to vector<8x8xbf16>
      %c1_97 = arith.constant 1 : index
      %c0_98 = arith.constant 0 : index
      %c0_99 = arith.constant 0 : index
      %183 = vector.load %arg19[%c1_97, %c0_98, %c0_99] : memref<4x8x8xbf16, #tpu.memory_space<vmem>>, vector<1x8x8xbf16>
      %184 = vector.shape_cast %183 : vector<1x8x8xbf16> to vector<8x8xbf16>
      %185 = vector.shape_cast %182 : vector<8x8xbf16> to vector<1x8x8xbf16>
      tpu.vector_store %arg19[%c1_97, %c0_98, %c0_99], %185 {strides = array<i32>} : memref<4x8x8xbf16, #tpu.memory_space<vmem>>, vector<1x8x8xbf16>,
      %186 = vector.extract_strided_slice %167 {offsets = [0, 16], sizes = [8, 8], strides = [1, 1]} : vector<8x32xbf16> to vector<8x8xbf16>
      %c2_100 = arith.constant 2 : index
      %c0_101 = arith.constant 0 : index
      %c0_102 = arith.constant 0 : index
      %187 = vector.load %arg18[%c2_100, %c0_101, %c0_102] : memref<4x8x8xbf16, #tpu.memory_space<vmem>>, vector<1x8x8xbf16>
      %188 = vector.shape_cast %187 : vector<1x8x8xbf16> to vector<8x8xbf16>
      %189 = vector.shape_cast %186 : vector<8x8xbf16> to vector<1x8x8xbf16>
      tpu.vector_store %arg18[%c2_100, %c0_101, %c0_102], %189 {strides = array<i32>} : memref<4x8x8xbf16, #tpu.memory_space<vmem>>, vector<1x8x8xbf16>,
      %190 = vector.extract_strided_slice %169 {offsets = [0, 16], sizes = [8, 8], strides = [1, 1]} : vector<8x32xbf16> to vector<8x8xbf16>
      %c2_103 = arith.constant 2 : index
      %c0_104 = arith.constant 0 : index
      %c0_105 = arith.constant 0 : index
      %191 = vector.load %arg19[%c2_103, %c0_104, %c0_105] : memref<4x8x8xbf16, #tpu.memory_space<vmem>>, vector<1x8x8xbf16>
      %192 = vector.shape_cast %191 : vector<1x8x8xbf16> to vector<8x8xbf16>
      %193 = vector.shape_cast %190 : vector<8x8xbf16> to vector<1x8x8xbf16>
      tpu.vector_store %arg19[%c2_103, %c0_104, %c0_105], %193 {strides = array<i32>} : memref<4x8x8xbf16, #tpu.memory_space<vmem>>, vector<1x8x8xbf16>,
      %194 = vector.extract_strided_slice %167 {offsets = [0, 24], sizes = [8, 8], strides = [1, 1]} : vector<8x32xbf16> to vector<8x8xbf16>
      %c3_106 = arith.constant 3 : index
      %c0_107 = arith.constant 0 : index
      %c0_108 = arith.constant 0 : index
      %195 = vector.load %arg18[%c3_106, %c0_107, %c0_108] : memref<4x8x8xbf16, #tpu.memory_space<vmem>>, vector<1x8x8xbf16>
      %196 = vector.shape_cast %195 : vector<1x8x8xbf16> to vector<8x8xbf16>
      %197 = vector.shape_cast %194 : vector<8x8xbf16> to vector<1x8x8xbf16>
      tpu.vector_store %arg18[%c3_106, %c0_107, %c0_108], %197 {strides = array<i32>} : memref<4x8x8xbf16, #tpu.memory_space<vmem>>, vector<1x8x8xbf16>,
      %198 = vector.extract_strided_slice %169 {offsets = [0, 24], sizes = [8, 8], strides = [1, 1]} : vector<8x32xbf16> to vector<8x8xbf16>
      %c3_109 = arith.constant 3 : index
      %c0_110 = arith.constant 0 : index
      %c0_111 = arith.constant 0 : index
      %199 = vector.load %arg19[%c3_109, %c0_110, %c0_111] : memref<4x8x8xbf16, #tpu.memory_space<vmem>>, vector<1x8x8xbf16>
      %200 = vector.shape_cast %199 : vector<1x8x8xbf16> to vector<8x8xbf16>
      %201 = vector.shape_cast %198 : vector<8x8xbf16> to vector<1x8x8xbf16>
      tpu.vector_store %arg19[%c3_109, %c0_110, %c0_111], %201 {strides = array<i32>} : memref<4x8x8xbf16, #tpu.memory_space<vmem>>, vector<1x8x8xbf16>,
    } else {
    }
    %c8_i32 = arith.constant 8 : i32
    %3 = arith.muli %arg1, %c8_i32 : i32
    %4 = tpu.assume_multiple %3, 8 : i32
    %c0 = arith.constant 0 : index
    %5 = arith.index_cast %4 : i32 to index
    %c0_1 = arith.constant 0 : index
    %6 = vector.load %arg3[%c0, %5, %c0_1] : memref<1x8x32xf32, #tpu.memory_space<vmem>>, vector<1x8x32xf32>
    %7 = vector.shape_cast %6 : vector<1x8x32xf32> to vector<8x32xf32>
    %8 = arith.index_cast %4 : i32 to index
    %c0_2 = arith.constant 0 : index
    %9 = vector.load %arg17[%8, %c0_2] : memref<8x32xbf16, #tpu.memory_space<vmem>>, vector<8x32xbf16>
    %c0_3 = arith.constant 0 : index
    %c0_4 = arith.constant 0 : index
    %10 = vector.load %arg4[%c0_3, %c0_4] : memref<32x96xbf16, #tpu.memory_space<vmem>>, vector<32x32xbf16>
    %cst = arith.constant dense<0.000000e+00> : vector<8x32xf32>
    %11 = tpu.matmul %9, %10, %cst {dimension_numbers = #tpu.dot_dimension_numbers<[1], [0], [0], [1], [0, 0, 1, 1], [], []>} : vector<8x32xbf16>, vector<32x32xbf16>, vector<8x32xf32> -> vector<8x32xf32>
    %c0_5 = arith.constant 0 : index
    %c0_6 = arith.constant 0 : index
    %12 = vector.load %arg5[%c0_5, %c0_6] : memref<1x96xf32, #tpu.memory_space<vmem>>, vector<1x32xf32>
    %13 = vector.broadcast %12 : vector<1x32xf32> to vector<8x32xf32>
    %14 = arith.addf %11, %13 : vector<8x32xf32>
    %cst_7 = arith.constant 0.353553385 : f32
    %15 = vector.broadcast %cst_7 : f32 to vector<8x32xf32>
    %16 = arith.mulf %14, %15 : vector<8x32xf32>
    %17 = arith.truncf %16 : vector<8x32xf32> to vector<8x32xbf16>
    %18 = vector.extract_strided_slice %17 {offsets = [0, 0], sizes = [8, 8], strides = [1, 1]} : vector<8x32xbf16> to vector<8x8xbf16>
    %c0_8 = arith.constant 0 : index
    %c0_9 = arith.constant 0 : index
    %c0_10 = arith.constant 0 : index
    %19 = vector.load %arg20[%c0_8, %c0_9, %c0_10] : memref<4x8x8xbf16, #tpu.memory_space<vmem>>, vector<1x8x8xbf16>
    %20 = vector.shape_cast %19 : vector<1x8x8xbf16> to vector<8x8xbf16>
    %21 = vector.shape_cast %18 : vector<8x8xbf16> to vector<1x8x8xbf16>
    tpu.vector_store %arg20[%c0_8, %c0_9, %c0_10], %21 {strides = array<i32>} : memref<4x8x8xbf16, #tpu.memory_space<vmem>>, vector<1x8x8xbf16>,
    %22 = vector.extract_strided_slice %17 {offsets = [0, 8], sizes = [8, 8], strides = [1, 1]} : vector<8x32xbf16> to vector<8x8xbf16>
    %c1 = arith.constant 1 : index
    %c0_11 = arith.constant 0 : index
    %c0_12 = arith.constant 0 : index
    %23 = vector.load %arg20[%c1, %c0_11, %c0_12] : memref<4x8x8xbf16, #tpu.memory_space<vmem>>, vector<1x8x8xbf16>
    %24 = vector.shape_cast %23 : vector<1x8x8xbf16> to vector<8x8xbf16>
    %25 = vector.shape_cast %22 : vector<8x8xbf16> to vector<1x8x8xbf16>
    tpu.vector_store %arg20[%c1, %c0_11, %c0_12], %25 {strides = array<i32>} : memref<4x8x8xbf16, #tpu.memory_space<vmem>>, vector<1x8x8xbf16>,
    %26 = vector.extract_strided_slice %17 {offsets = [0, 16], sizes = [8, 8], strides = [1, 1]} : vector<8x32xbf16> to vector<8x8xbf16>
    %c2 = arith.constant 2 : index
    %c0_13 = arith.constant 0 : index
    %c0_14 = arith.constant 0 : index
    %27 = vector.load %arg20[%c2, %c0_13, %c0_14] : memref<4x8x8xbf16, #tpu.memory_space<vmem>>, vector<1x8x8xbf16>
    %28 = vector.shape_cast %27 : vector<1x8x8xbf16> to vector<8x8xbf16>
    %29 = vector.shape_cast %26 : vector<8x8xbf16> to vector<1x8x8xbf16>
    tpu.vector_store %arg20[%c2, %c0_13, %c0_14], %29 {strides = array<i32>} : memref<4x8x8xbf16, #tpu.memory_space<vmem>>, vector<1x8x8xbf16>,
    %30 = vector.extract_strided_slice %17 {offsets = [0, 24], sizes = [8, 8], strides = [1, 1]} : vector<8x32xbf16> to vector<8x8xbf16>
    %c3 = arith.constant 3 : index
    %c0_15 = arith.constant 0 : index
    %c0_16 = arith.constant 0 : index
    %31 = vector.load %arg20[%c3, %c0_15, %c0_16] : memref<4x8x8xbf16, #tpu.memory_space<vmem>>, vector<1x8x8xbf16>
    %32 = vector.shape_cast %31 : vector<1x8x8xbf16> to vector<8x8xbf16>
    %33 = vector.shape_cast %30 : vector<8x8xbf16> to vector<1x8x8xbf16>
    tpu.vector_store %arg20[%c3, %c0_15, %c0_16], %33 {strides = array<i32>} : memref<4x8x8xbf16, #tpu.memory_space<vmem>>, vector<1x8x8xbf16>,
    %34 = tpu.iota {dimensions = array<i32: 2>} : vector<1x1x8xi32>
    %35 = arith.index_cast %arg0 : i32 to index
    %36 = memref.load %arg2[%35] : memref<2xi32, #tpu.memory_space<smem>>
    %37 = vector.broadcast %36 : i32 to vector<1x1x8xi32>
    %38 = arith.cmpi slt, %34, %37 : vector<1x1x8xi32>
    %cst_17 = arith.constant 0.000000e+00 : f32
    %cst_18 = arith.constant -1.000000e+09 : f32
    %39 = vector.broadcast %cst_17 : f32 to vector<1x1x8xf32>
    %40 = vector.broadcast %cst_18 : f32 to vector<1x1x8xf32>
    %41 = arith.select %38, %39, %40 : vector<1x1x8xi1>, vector<1x1x8xf32>
    %c0_19 = arith.constant 0 : index
    %c0_20 = arith.constant 0 : index
    %c0_21 = arith.constant 0 : index
    %42 = vector.load %arg20[%c0_19, %c0_20, %c0_21] : memref<4x8x8xbf16, #tpu.memory_space<vmem>>, vector<4x8x8xbf16>
    %c0_22 = arith.constant 0 : index
    %c0_23 = arith.constant 0 : index
    %c0_24 = arith.constant 0 : index
    %43 = vector.load %arg18[%c0_22, %c0_23, %c0_24] : memref<4x8x8xbf16, #tpu.memory_space<vmem>>, vector<4x8x8xbf16>
    "tpu.trace_start"() <{level = 10 : i32, message = "hqd,hkd->hqk"}> : () -> ()
    %cst_25 = arith.constant dense<0.000000e+00> : vector<4x8x8xf32>
    %44 = tpu.matmul %42, %43, %cst_25 {dimension_numbers = #tpu.dot_dimension_numbers<[2], [2], [1], [1], [0, 0, 0, 1, 1, 1], [0], [0]>} : vector<4x8x8xbf16>, vector<4x8x8xbf16>, vector<4x8x8xf32> -> vector<4x8x8xf32>
    "tpu.trace_stop"() : () -> ()
    %45 = vector.broadcast %41 : vector<1x1x8xf32> to vector<4x8x8xf32>
    %46 = arith.addf %44, %45 : vector<4x8x8xf32>
    %cst_26 = arith.constant dense<0xFF800000> : vector<4x8xf32>
    %47 = vector.multi_reduction <maximumf>, %46, %cst_26 [2] : vector<4x8x8xf32> to vector<4x8xf32>
    %48 = vector.shape_cast %47 : vector<4x8xf32> to vector<4x8x1xf32>
    %49 = vector.broadcast %48 : vector<4x8x1xf32> to vector<4x8x8xf32>
    %50 = arith.subf %46, %49 : vector<4x8x8xf32>
    %51 = math.exp %50 : vector<4x8x8xf32>
    %cst_27 = arith.constant dense<0.000000e+00> : vector<4x8xf32>
    %52 = vector.multi_reduction <add>, %51, %cst_27 [2] : vector<4x8x8xf32> to vector<4x8xf32>
    %53 = vector.shape_cast %52 : vector<4x8xf32> to vector<4x8x1xf32>
    %54 = tpu.reciprocal %53 {approx = true} : vector<4x8x1xf32> -> vector<4x8x1xf32>
    %55 = vector.broadcast %54 : vector<4x8x1xf32> to vector<4x8x8xf32>
    %56 = arith.mulf %51, %55 : vector<4x8x8xf32>
    %57 = arith.truncf %56 : vector<4x8x8xf32> to vector<4x8x8xbf16>
    %c0_28 = arith.constant 0 : index
    %c0_29 = arith.constant 0 : index
    %c0_30 = arith.constant 0 : index
    %58 = vector.load %arg19[%c0_28, %c0_29, %c0_30] : memref<4x8x8xbf16, #tpu.memory_space<vmem>>, vector<4x8x8xbf16>
    "tpu.trace_start"() <{level = 10 : i32, message = "hqk,hkd->hqd"}> : () -> ()
    %cst_31 = arith.constant dense<0.000000e+00> : vector<4x8x8xf32>
    %59 = tpu.matmul %57, %58, %cst_31 {dimension_numbers = #tpu.dot_dimension_numbers<[2], [1], [1], [2], [0, 0, 0, 1, 1, 2], [0], [0]>} : vector<4x8x8xbf16>, vector<4x8x8xbf16>, vector<4x8x8xf32> -> vector<4x8x8xf32>
    "tpu.trace_stop"() : () -> ()
    %60 = vector.extract_strided_slice %59 {offsets = [0, 0, 0], sizes = [1, 8, 8], strides = [1, 1, 1]} : vector<4x8x8xf32> to vector<1x8x8xf32>
    %61 = vector.shape_cast %60 : vector<1x8x8xf32> to vector<8x8xf32>
    %c0_32 = arith.constant 0 : index
    %c0_33 = arith.constant 0 : index
    %62 = vector.load %arg21[%c0_32, %c0_33] : memref<8x32xf32, #tpu.memory_space<vmem>>, vector<8x8xf32>
    tpu.vector_store %arg21[%c0_32, %c0_33], %61 {strides = array<i32>} : memref<8x32xf32, #tpu.memory_space<vmem>>, vector<8x8xf32>,
    %63 = vector.extract_strided_slice %59 {offsets = [1, 0, 0], sizes = [1, 8, 8], strides = [1, 1, 1]} : vector<4x8x8xf32> to vector<1x8x8xf32>
    %64 = vector.shape_cast %63 : vector<1x8x8xf32> to vector<8x8xf32>
    %c0_34 = arith.constant 0 : index
    %c8 = arith.constant 8 : index
    %65 = vector.load %arg21[%c0_34, %c8] : memref<8x32xf32, #tpu.memory_space<vmem>>, vector<8x8xf32>
    tpu.vector_store %arg21[%c0_34, %c8], %64 {strides = array<i32>} : memref<8x32xf32, #tpu.memory_space<vmem>>, vector<8x8xf32>,
    %66 = vector.extract_strided_slice %59 {offsets = [2, 0, 0], sizes = [1, 8, 8], strides = [1, 1, 1]} : vector<4x8x8xf32> to vector<1x8x8xf32>
    %67 = vector.shape_cast %66 : vector<1x8x8xf32> to vector<8x8xf32>
    %c0_35 = arith.constant 0 : index
    %c16 = arith.constant 16 : index
    %68 = vector.load %arg21[%c0_35, %c16] : memref<8x32xf32, #tpu.memory_space<vmem>>, vector<8x8xf32>
    tpu.vector_store %arg21[%c0_35, %c16], %67 {strides = array<i32>} : memref<8x32xf32, #tpu.memory_space<vmem>>, vector<8x8xf32>,
    %69 = vector.extract_strided_slice %59 {offsets = [3, 0, 0], sizes = [1, 8, 8], strides = [1, 1, 1]} : vector<4x8x8xf32> to vector<1x8x8xf32>
    %70 = vector.shape_cast %69 : vector<1x8x8xf32> to vector<8x8xf32>
    %c0_36 = arith.constant 0 : index
    %c24 = arith.constant 24 : index
    %71 = vector.load %arg21[%c0_36, %c24] : memref<8x32xf32, #tpu.memory_space<vmem>>, vector<8x8xf32>
    tpu.vector_store %arg21[%c0_36, %c24], %70 {strides = array<i32>} : memref<8x32xf32, #tpu.memory_space<vmem>>, vector<8x8xf32>,
    %c0_37 = arith.constant 0 : index
    %c0_38 = arith.constant 0 : index
    %72 = vector.load %arg21[%c0_37, %c0_38] : memref<8x32xf32, #tpu.memory_space<vmem>>, vector<8x32xf32>
    %73 = arith.truncf %72 : vector<8x32xf32> to vector<8x32xbf16>
    %c0_39 = arith.constant 0 : index
    %c0_40 = arith.constant 0 : index
    %74 = vector.load %arg6[%c0_39, %c0_40] : memref<32x32xbf16, #tpu.memory_space<vmem>>, vector<32x32xbf16>
    %cst_41 = arith.constant dense<0.000000e+00> : vector<8x32xf32>
    %75 = tpu.matmul %73, %74, %cst_41 {dimension_numbers = #tpu.dot_dimension_numbers<[1], [0], [0], [1], [0, 0, 1, 1], [], []>} : vector<8x32xbf16>, vector<32x32xbf16>, vector<8x32xf32> -> vector<8x32xf32>
    %c0_42 = arith.constant 0 : index
    %c0_43 = arith.constant 0 : index
    %76 = vector.load %arg7[%c0_42, %c0_43] : memref<1x32xf32, #tpu.memory_space<vmem>>, vector<1x32xf32>
    %77 = vector.broadcast %76 : vector<1x32xf32> to vector<8x32xf32>
    %78 = arith.addf %75, %77 : vector<8x32xf32>
    %79 = arith.addf %7, %78 : vector<8x32xf32>
    %c0_44 = arith.constant 0 : index
    %c0_45 = arith.constant 0 : index
    %80 = vector.load %arg10[%c0_44, %c0_45] : memref<1x32xf32, #tpu.memory_space<vmem>>, vector<1x32xf32>
    %c0_46 = arith.constant 0 : index
    %c0_47 = arith.constant 0 : index
    %81 = vector.load %arg11[%c0_46, %c0_47] : memref<1x32xf32, #tpu.memory_space<vmem>>, vector<1x32xf32>
    %cst_48 = arith.constant dense<0.000000e+00> : vector<8xf32>
    %82 = vector.multi_reduction <add>, %79, %cst_48 [1] : vector<8x32xf32> to vector<8xf32>
    %83 = vector.shape_cast %82 : vector<8xf32> to vector<8x1xf32>
    %cst_49 = arith.constant 3.200000e+01 : f32
    %84 = vector.broadcast %cst_49 : f32 to vector<8x1xf32>
    %85 = arith.divf %83, %84 : vector<8x1xf32>
    %86 = vector.broadcast %85 : vector<8x1xf32> to vector<8x32xf32>
    %87 = arith.subf %79, %86 : vector<8x32xf32>
    %88 = arith.mulf %87, %87 : vector<8x32xf32>
    %cst_50 = arith.constant dense<0.000000e+00> : vector<8xf32>
    %89 = vector.multi_reduction <add>, %88, %cst_50 [1] : vector<8x32xf32> to vector<8xf32>
    %90 = vector.shape_cast %89 : vector<8xf32> to vector<8x1xf32>
    %cst_51 = arith.constant 3.100000e+01 : f32
    %91 = vector.broadcast %cst_51 : f32 to vector<8x1xf32>
    %92 = arith.divf %90, %91 : vector<8x1xf32>
    %93 = vector.broadcast %85 : vector<8x1xf32> to vector<8x32xf32>
    %94 = arith.subf %79, %93 : vector<8x32xf32>
    %95 = vector.broadcast %80 : vector<1x32xf32> to vector<8x32xf32>
    %96 = arith.mulf %95, %94 : vector<8x32xf32>
    %97 = math.sqrt %92 : vector<8x1xf32>
    %cst_52 = arith.constant 9.99999997E-7 : f32
    %98 = vector.broadcast %cst_52 : f32 to vector<8x1xf32>
    %99 = arith.addf %97, %98 : vector<8x1xf32>
    %100 = vector.broadcast %99 : vector<8x1xf32> to vector<8x32xf32>
    %101 = arith.divf %96, %100 : vector<8x32xf32>
    %102 = vector.broadcast %81 : vector<1x32xf32> to vector<8x32xf32>
    %103 = arith.addf %101, %102 : vector<8x32xf32>
    %104 = arith.truncf %103 : vector<8x32xf32> to vector<8x32xbf16>
    %c0_53 = arith.constant 0 : index
    %c0_54 = arith.constant 0 : index
    %105 = vector.load %arg12[%c0_53, %c0_54] : memref<32x128xbf16, #tpu.memory_space<vmem>>, vector<32x128xbf16>
    %cst_55 = arith.constant dense<0.000000e+00> : vector<8x128xf32>
    %106 = tpu.matmul %104, %105, %cst_55 {dimension_numbers = #tpu.dot_dimension_numbers<[1], [0], [0], [1], [0, 0, 1, 1], [], []>} : vector<8x32xbf16>, vector<32x128xbf16>, vector<8x128xf32> -> vector<8x128xf32>
    %c0_56 = arith.constant 0 : index
    %c0_57 = arith.constant 0 : index
    %107 = vector.load %arg13[%c0_56, %c0_57] : memref<1x128xf32, #tpu.memory_space<vmem>>, vector<1x128xf32>
    %108 = vector.broadcast %107 : vector<1x128xf32> to vector<8x128xf32>
    %109 = arith.addf %106, %108 : vector<8x128xf32>
    %cst_58 = arith.constant 5.000000e-01 : f32
    %110 = vector.broadcast %cst_58 : f32 to vector<8x128xf32>
    %111 = arith.mulf %110, %109 : vector<8x128xf32>
    %112 = arith.mulf %109, %109 : vector<8x128xf32>
    %113 = arith.mulf %109, %112 : vector<8x128xf32>
    %cst_59 = arith.constant 4.471500e-02 : f32
    %114 = vector.broadcast %cst_59 : f32 to vector<8x128xf32>
    %115 = arith.mulf %114, %113 : vector<8x128xf32>
    %116 = arith.addf %109, %115 : vector<8x128xf32>
    %cst_60 = arith.constant 0.797884583 : f32
    %117 = vector.broadcast %cst_60 : f32 to vector<8x128xf32>
    %118 = arith.mulf %117, %116 : vector<8x128xf32>
    %119 = math.tanh %118 : vector<8x128xf32>
    %cst_61 = arith.constant 1.000000e+00 : f32
    %120 = vector.broadcast %cst_61 : f32 to vector<8x128xf32>
    %121 = arith.addf %120, %119 : vector<8x128xf32>
    %122 = arith.mulf %111, %121 : vector<8x128xf32>
    %123 = arith.truncf %122 : vector<8x128xf32> to vector<8x128xbf16>
    %c0_62 = arith.constant 0 : index
    %c0_63 = arith.constant 0 : index
    %124 = vector.load %arg14[%c0_62, %c0_63] : memref<128x32xbf16, #tpu.memory_space<vmem>>, vector<128x32xbf16>
    %cst_64 = arith.constant dense<0.000000e+00> : vector<8x32xf32>
    %125 = tpu.matmul %123, %124, %cst_64 {dimension_numbers = #tpu.dot_dimension_numbers<[1], [0], [0], [1], [0, 0, 1, 1], [], []>} : vector<8x128xbf16>, vector<128x32xbf16>, vector<8x32xf32> -> vector<8x32xf32>
    %c0_65 = arith.constant 0 : index
    %c0_66 = arith.constant 0 : index
    %126 = vector.load %arg15[%c0_65, %c0_66] : memref<1x32xf32, #tpu.memory_space<vmem>>, vector<1x32xf32>
    %127 = vector.broadcast %126 : vector<1x32xf32> to vector<8x32xf32>
    %128 = arith.addf %125, %127 : vector<8x32xf32>
    %129 = arith.addf %79, %128 : vector<8x32xf32>
    %c0_67 = arith.constant 0 : index
    %c0_68 = arith.constant 0 : index
    %c0_69 = arith.constant 0 : index
    %130 = vector.load %arg16[%c0_67, %c0_68, %c0_69] : memref<1x8x32xf32, #tpu.memory_space<vmem>>, vector<1x8x32xf32>
    %131 = vector.shape_cast %130 : vector<1x8x32xf32> to vector<8x32xf32>
    %132 = vector.shape_cast %129 : vector<8x32xf32> to vector<1x8x32xf32>
    tpu.vector_store %arg16[%c0_67, %c0_68, %c0_69], %132 {strides = array<i32>} : memref<1x8x32xf32, #tpu.memory_space<vmem>>, vector<1x8x32xf32>,
    return
  }
  func.func @transform_0(%arg0: i32, %arg1: i32, %arg2: memref<2xi32, #tpu.memory_space<smem>>) -> (i32, i32, i32) {
    %c0_i32 = arith.constant 0 : i32
    %c0_i32_0 = arith.constant 0 : i32
    %c0_i32_1 = arith.constant 0 : i32
    return %arg0, %c0_i32, %c0_i32_0 : i32, i32, i32
  }
  func.func @transform_1(%arg0: i32, %arg1: i32, %arg2: memref<2xi32, #tpu.memory_space<smem>>) -> (i32, i32) {
    %c0_i32 = arith.constant 0 : i32
    %c0_i32_0 = arith.constant 0 : i32
    %c0_i32_1 = arith.constant 0 : i32
    return %c0_i32, %c0_i32_0 : i32, i32
  }
  func.func @transform_2(%arg0: i32, %arg1: i32, %arg2: memref<2xi32, #tpu.memory_space<smem>>) -> (i32, i32) {
    %c0_i32 = arith.constant 0 : i32
    %c0_i32_0 = arith.constant 0 : i32
    %c0_i32_1 = arith.constant 0 : i32
    return %c0_i32, %c0_i32_0 : i32, i32
  }
  func.func @transform_3(%arg0: i32, %arg1: i32, %arg2: memref<2xi32, #tpu.memory_space<smem>>) -> (i32, i32) {
    %c0_i32 = arith.constant 0 : i32
    %c0_i32_0 = arith.constant 0 : i32
    %c0_i32_1 = arith.constant 0 : i32
    return %c0_i32, %c0_i32_0 : i32, i32
  }
  func.func @transform_4(%arg0: i32, %arg1: i32, %arg2: memref<2xi32, #tpu.memory_space<smem>>) -> (i32, i32) {
    %c0_i32 = arith.constant 0 : i32
    %c0_i32_0 = arith.constant 0 : i32
    %c0_i32_1 = arith.constant 0 : i32
    return %c0_i32, %c0_i32_0 : i32, i32
  }
  func.func @transform_5(%arg0: i32, %arg1: i32, %arg2: memref<2xi32, #tpu.memory_space<smem>>) -> (i32, i32) {
    %c0_i32 = arith.constant 0 : i32
    %c0_i32_0 = arith.constant 0 : i32
    %c0_i32_1 = arith.constant 0 : i32
    return %c0_i32, %c0_i32_0 : i32, i32
  }
  func.func @transform_6(%arg0: i32, %arg1: i32, %arg2: memref<2xi32, #tpu.memory_space<smem>>) -> (i32, i32) {
    %c0_i32 = arith.constant 0 : i32
    %c0_i32_0 = arith.constant 0 : i32
    %c0_i32_1 = arith.constant 0 : i32
    return %c0_i32, %c0_i32_0 : i32, i32
  }
  func.func @transform_7(%arg0: i32, %arg1: i32, %arg2: memref<2xi32, #tpu.memory_space<smem>>) -> (i32, i32) {
    %c0_i32 = arith.constant 0 : i32
    %c0_i32_0 = arith.constant 0 : i32
    %c0_i32_1 = arith.constant 0 : i32
    return %c0_i32, %c0_i32_0 : i32, i32
  }
  func.func @transform_8(%arg0: i32, %arg1: i32, %arg2: memref<2xi32, #tpu.memory_space<smem>>) -> (i32, i32) {
    %c0_i32 = arith.constant 0 : i32
    %c0_i32_0 = arith.constant 0 : i32
    %c0_i32_1 = arith.constant 0 : i32
    return %c0_i32, %c0_i32_0 : i32, i32
  }
  func.func @transform_9(%arg0: i32, %arg1: i32, %arg2: memref<2xi32, #tpu.memory_space<smem>>) -> (i32, i32) {
    %c0_i32 = arith.constant 0 : i32
    %c0_i32_0 = arith.constant 0 : i32
    %c0_i32_1 = arith.constant 0 : i32
    return %c0_i32, %c0_i32_0 : i32, i32
  }
  func.func @transform_10(%arg0: i32, %arg1: i32, %arg2: memref<2xi32, #tpu.memory_space<smem>>) -> (i32, i32) {
    %c0_i32 = arith.constant 0 : i32
    %c0_i32_0 = arith.constant 0 : i32
    %c0_i32_1 = arith.constant 0 : i32
    return %c0_i32, %c0_i32_0 : i32, i32
  }
  func.func @transform_11(%arg0: i32, %arg1: i32, %arg2: memref<2xi32, #tpu.memory_space<smem>>) -> (i32, i32) {
    %c0_i32 = arith.constant 0 : i32
    %c0_i32_0 = arith.constant 0 : i32
    %c0_i32_1 = arith.constant 0 : i32
    return %c0_i32, %c0_i32_0 : i32, i32
  }
  func.func @transform_12(%arg0: i32, %arg1: i32, %arg2: memref<2xi32, #tpu.memory_space<smem>>) -> (i32, i32) {
    %c0_i32 = arith.constant 0 : i32
    %c0_i32_0 = arith.constant 0 : i32
    %c0_i32_1 = arith.constant 0 : i32
    return %c0_i32, %c0_i32_0 : i32, i32
  }
  func.func @transform_13(%arg0: i32, %arg1: i32, %arg2: memref<2xi32, #tpu.memory_space<smem>>) -> (i32, i32, i32) {
    %c0_i32 = arith.constant 0 : i32
    %c0_i32_0 = arith.constant 0 : i32
    return %arg0, %arg1, %c0_i32 : i32, i32, i32
  }
}

module attributes {stable_mosaic.version = 11 : i64} {
  func.func @enc_block_kernel(%arg0: i32, %arg1: i32, %arg2: memref<2xi32, #tpu.memory_space<smem>>, %arg3: memref<1x8x32xf32, #tpu.memory_space<vmem>>, %arg4: memref<32x96xbf16, #tpu.memory_space<vmem>>, %arg5: memref<1x96xf32, #tpu.memory_space<vmem>>, %arg6: memref<32x32xbf16, #tpu.memory_space<vmem>>, %arg7: memref<1x32xf32, #tpu.memory_space<vmem>>, %arg8: memref<1x32xf32, #tpu.memory_space<vmem>>, %arg9: memref<1x32xf32, #tpu.memory_space<vmem>>, %arg10: memref<1x32xf32, #tpu.memory_space<vmem>>, %arg11: memref<1x32xf32, #tpu.memory_space<vmem>>, %arg12: memref<32x128xbf16, #tpu.memory_space<vmem>>, %arg13: memref<1x128xf32, #tpu.memory_space<vmem>>, %arg14: memref<128x32xbf16, #tpu.memory_space<vmem>>, %arg15: memref<1x32xf32, #tpu.memory_space<vmem>>, %arg16: memref<1x8x32xf32, #tpu.memory_space<vmem>>, %arg17: memref<8x32xbf16, #tpu.memory_space<vmem>>, %arg18: memref<4x8x8xbf16, #tpu.memory_space<vmem>>, %arg19: memref<4x8x8xbf16, #tpu.memory_space<vmem>>, %arg20: memref<4x8x8xbf16, #tpu.memory_space<vmem>>, %arg21: memref<8x32xf32, #tpu.memory_space<vmem>>) attributes {dimension_semantics = [#tpu.dimension_semantics<parallel>, #tpu.dimension_semantics<arbitrary>], iteration_bounds = array<i64: 2, 1>, scalar_prefetch = 1 : i64, scratch_operands = 5 : i64, tpu.core_type = #tpu.core_type<tc>, window_params = [{transform_indices = @transform_0, window_bounds = array<i64: 1, 8, 32>}, {pipeline_mode = #tpu.pipeline_mode<synchronous>, transform_indices = @transform_1, window_bounds = array<i64: 32, 96>}, {pipeline_mode = #tpu.pipeline_mode<synchronous>, transform_indices = @transform_2, window_bounds = array<i64: 1, 96>}, {pipeline_mode = #tpu.pipeline_mode<synchronous>, transform_indices = @transform_3, window_bounds = array<i64: 32, 32>}, {pipeline_mode = #tpu.pipeline_mode<synchronous>, transform_indices = @transform_4, window_bounds = array<i64: 1, 32>}, {pipeline_mode = #tpu.pipeline_mode<synchronous>, transform_indices = @transform_5, window_bounds = array<i64: 1, 32>}, {pipeline_mode = #tpu.pipeline_mode<synchronous>, transform_indices = @transform_6, window_bounds = array<i64: 1, 32>}, {pipeline_mode = #tpu.pipeline_mode<synchronous>, transform_indices = @transform_7, window_bounds = array<i64: 1, 32>}, {pipeline_mode = #tpu.pipeline_mode<synchronous>, transform_indices = @transform_8, window_bounds = array<i64: 1, 32>}, {pipeline_mode = #tpu.pipeline_mode<synchronous>, transform_indices = @transform_9, window_bounds = array<i64: 32, 128>}, {pipeline_mode = #tpu.pipeline_mode<synchronous>, transform_indices = @transform_10, window_bounds = array<i64: 1, 128>}, {pipeline_mode = #tpu.pipeline_mode<synchronous>, transform_indices = @transform_11, window_bounds = array<i64: 128, 32>}, {pipeline_mode = #tpu.pipeline_mode<synchronous>, transform_indices = @transform_12, window_bounds = array<i64: 1, 32>}, {transform_indices = @transform_13, window_bounds = array<i64: 1, 8, 32>}]} {
    %c0_i32 = arith.constant 0 : i32
    %0 = arith.cmpi eq, %arg1, %c0_i32 : i32
    %1 = arith.extui %0 : i1 to i32
    %c0_i32_0 = arith.constant 0 : i32
    %2 = arith.cmpi ne, %1, %c0_i32_0 : i32
    scf.if %2 {
      %c0_70 = arith.constant 0 : index
      %c0_71 = arith.constant 0 : index
      %c0_72 = arith.constant 0 : index
      %133 = vector.load %arg3[%c0_70, %c0_71, %c0_72] : memref<1x8x32xf32, #tpu.memory_space<vmem>>, vector<1x8x32xf32>
      %134 = vector.shape_cast %133 : vector<1x8x32xf32> to vector<8x32xf32>
      %c0_73 = arith.constant 0 : index
      %c0_74 = arith.constant 0 : index
      %135 = vector.load %arg8[%c0_73, %c0_74] : memref<1x32xf32, #tpu.memory_space<vmem>>, vector<1x32xf32>
      %c0_75 = arith.constant 0 : index
      %c0_76 = arith.constant 0 : index
      %136 = vector.load %arg9[%c0_75, %c0_76] : memref<1x32xf32, #tpu.memory_space<vmem>>, vector<1x32xf32>
      %cst_77 = arith.constant dense<0.000000e+00> : vector<8xf32>
      %137 = vector.multi_reduction <add>, %134, %cst_77 [1] : vector<8x32xf32> to vector<8xf32>
      %138 = vector.shape_cast %137 : vector<8xf32> to vector<8x1xf32>
      %cst_78 = arith.constant 3.200000e+01 : f32
      %139 = vector.broadcast %cst_78 : f32 to vector<8x1xf32>
      %140 = arith.divf %138, %139 : vector<8x1xf32>
      %141 = vector.broadcast %140 : vector<8x1xf32> to vector<8x32xf32>
      %142 = arith.subf %134, %141 : vector<8x32xf32>
      %143 = arith.mulf %142, %142 : vector<8x32xf32>
      %cst_79 = arith.constant dense<0.000000e+00> : vector<8xf32>
      %144 = vector.multi_reduction <add>, %143, %cst_79 [1] : vector<8x32xf32> to vector<8xf32>
      %145 = vector.shape_cast %144 : vector<8xf32> to vector<8x1xf32>
      %cst_80 = arith.constant 3.100000e+01 : f32
      %146 = vector.broadcast %cst_80 : f32 to vector<8x1xf32>
      %147 = arith.divf %145, %146 : vector<8x1xf32>
      %148 = vector.broadcast %140 : vector<8x1xf32> to vector<8x32xf32>
      %149 = arith.subf %134, %148 : vector<8x32xf32>
      %150 = vector.broadcast %135 : vector<1x32xf32> to vector<8x32xf32>
      %151 = arith.mulf %150, %149 : vector<8x32xf32>
      %152 = math.sqrt %147 : vector<8x1xf32>
      %cst_81 = arith.constant 9.99999997E-7 : f32
      %153 = vector.broadcast %cst_81 : f32 to vector<8x1xf32>
      %154 = arith.addf %152, %153 : vector<8x1xf32>
      %155 = vector.broadcast %154 : vector<8x1xf32> to vector<8x32xf32>
      %156 = arith.divf %151, %155 : vector<8x32xf32>
      %157 = vector.broadcast %136 : vector<1x32xf32> to vector<8x32xf32>
      %158 = arith.addf %156, %157 : vector<8x32xf32>
      %159 = arith.truncf %158 : vector<8x32xf32> to vector<8x32xbf16>
      %c0_82 = arith.constant 0 : index
      %c0_83 = arith.constant 0 : index
      %160 = vector.load %arg17[%c0_82, %c0_83] : memref<8x32xbf16, #tpu.memory_space<vmem>>, vector<8x32xbf16>
      tpu.vector_store %arg17[%c0_82, %c0_83], %159 {strides = array<i32>} : memref<8x32xbf16, #tpu.memory_space<vmem>>, vector<8x32xbf16>,
      %c0_84 = arith.constant 0 : index
      %c32 = arith.constant 32 : index
      %161 = vector.load %arg4[%c0_84, %c32] : memref<32x96xbf16, #tpu.memory_space<vmem>>, vector<32x64xbf16>
      %cst_85 = arith.constant dense<0.000000e+00> : vector<8x64xf32>
      %162 = tpu.matmul %159, %161, %cst_85 {dimension_numbers = #tpu.dot_dimension_numbers<[1], [0], [0], [1], [0, 0, 1, 1], [], []>} : vector<8x32xbf16>, vector<32x64xbf16>, vector<8x64xf32> -> vector<8x64xf32>
      %c0_86 = arith.constant 0 : index
      %c32_87 = arith.constant 32 : index
      %163 = vector.load %arg5[%c0_86, %c32_87] : memref<1x96xf32, #tpu.memory_space<vmem>>, vector<1x64xf32>
      %164 = vector.broadcast %163 : vector<1x64xf32> to vector<8x64xf32>
      %165 = arith.addf %162, %164 : vector<8x64xf32>
      %166 = vector.extract_strided_slice %165 {offsets = [0, 0], sizes = [8, 32], strides = [1, 1]} : vector<8x64xf32> to vector<8x32xf32>
      %167 = arith.truncf %166 : vector<8x32xf32> to vector<8x32xbf16>
      %168 = vector.extract_strided_slice %165 {offsets = [0, 32], sizes = [8, 32], strides = [1, 1]} : vector<8x64xf32> to vector<8x32xf32>
      %169 = arith.truncf %168 : vector<8x32xf32> to vector<8x32xbf16>
      %170 = vector.extract_strided_slice %167 {offsets = [0, 0], sizes = [8, 8], strides = [1, 1]} : vector<8x32xbf16> to vector<8x8xbf16>
      %c0_88 = arith.constant 0 : index
      %c0_89 = arith.constant 0 : index
      %c0_90 = arith.constant 0 : index
      %171 = vector.load %arg18[%c0_88, %c0_89, %c0_90] : memref<4x8x8xbf16, #tpu.memory_space<vmem>>, vector<1x8x8xbf16>
      %172 = vector.shape_cast %171 : vector<1x8x8xbf16> to vector<8x8xbf16>
      %173 = vector.shape_cast %170 : vector<8x8xbf16> to vector<1x8x8xbf16>
      tpu.vector_store %arg18[%c0_88, %c0_89, %c0_90], %173 {strides = array<i32>} : memref<4x8x8xbf16, #tpu.memory_space<vmem>>, vector<1x8x8xbf16>,
      %174 = vector.extract_strided_slice %169 {offsets = [0, 0], sizes = [8, 8], strides = [1, 1]} : vector<8x32xbf16> to vector<8x8xbf16>
      %c0_91 = arith.constant 0 : index
      %c0_92 = arith.constant 0 : index
      %c0_93 = arith.constant 0 : index
      %175 = vector.load %arg19[%c0_91, %c0_92, %c0_93] : memref<4x8x8xbf16, #tpu.memory_space<vmem>>, vector<1x8x8xbf16>
      %176 = vector.shape_cast %175 : vector<1x8x8xbf16> to vector<8x8xbf16>
      %177 = vector.shape_cast %174 : vector<8x8xbf16> to vector<1x8x8xbf16>
      tpu.vector_store %arg19[%c0_91, %c0_92, %c0_93], %177 {strides = array<i32>} : memref<4x8x8xbf16, #tpu.memory_space<vmem>>, vector<1x8x8xbf16>,
      %178 = vector.extract_strided_slice %167 {offsets = [0, 8], sizes = [8, 8], strides = [1, 1]} : vector<8x32xbf16> to vector<8x8xbf16>
      %c1_94 = arith.constant 1 : index
      %c0_95 = arith.constant 0 : index
      %c0_96 = arith.constant 0 : index
      %179 = vector.load %arg18[%c1_94, %c0_95, %c0_96] : memref<4x8x8xbf16, #tpu.memory_space<vmem>>, vector<1x8x8xbf16>
      %180 = vector.shape_cast %179 : vector<1x8x8xbf16> to vector<8x8xbf16>
      %181 = vector.shape_cast %178 : vector<8x8xbf16> to vector<1x8x8xbf16>
      tpu.vector_store %arg18[%c1_94, %c0_95, %c0_96], %181 {strides = array<i32>} : memref<4x8x8xbf16, #tpu.memory_space<vmem>>, vector<1x8x8xbf16>,
      %182 = vector.extract_strided_slice %169 {offsets = [0, 8], sizes = [8, 8], strides = [1, 1]} : vector<8x32xbf16> to vector<8x8xbf16>
      %c1_97 = arith.constant 1 : index
      %c0_98 = arith.constant 0 : index
      %c0_99 = arith.constant 0 : index
      %183 = vector.load %arg19[%c1_97, %c0_98, %c0_99] : memref<4x8x8xbf16, #tpu.memory_space<vmem>>, vector<1x8x8xbf16>
      %184 = vector.shape_cast %183 : vector<1x8x8xbf16> to vector<8x8xbf16>
      %185 = vector.shape_cast %182 : vector<8x8xbf16> to vector<1x8x8xbf16>
      tpu.vector_store %arg19[%c1_97, %c0_98, %c0_99], %185 {strides = array<i32>} : memref<4x8x8xbf16, #tpu.memory_space<vmem>>, vector<1x8x8xbf16>,
      %186 = vector.extract_strided_slice %167 {offsets = [0, 16], sizes = [8, 8], strides = [1, 1]} : vector<8x32xbf16> to vector<8x8xbf16>
      %c2_100 = arith.constant 2 : index
      %c0_101 = arith.constant 0 : index
      %c0_102 = arith.constant 0 : index
      %187 = vector.load %arg18[%c2_100, %c0_101, %c0_102] : memref<4x8x8xbf16, #tpu.memory_space<vmem>>, vector<1x8x8xbf16>
      %188 = vector.shape_cast %187 : vector<1x8x8xbf16> to vector<8x8xbf16>
      %189 = vector.shape_cast %186 : vector<8x8xbf16> to vector<1x8x8xbf16>
      tpu.vector_store %arg18[%c2_100, %c0_101, %c0_102], %189 {strides = array<i32>} : memref<4x8x8xbf16, #tpu.memory_space<vmem>>, vector<1x8x8xbf16>,
      %190 = vector.extract_strided_slice %169 {offsets = [0, 16], sizes = [8, 8], strides = [1, 1]} : vector<8x32xbf16> to vector<8x8xbf16>
      %c2_103 = arith.constant 2 : index
      %c0_104 = arith.constant 0 : index
      %c0_105 = arith.constant 0 : index
      %191 = vector.load %arg19[%c2_103, %c0_104, %c0_105] : memref<4x8x8xbf16, #tpu.memory_space<vmem>>, vector<1x8x8xbf16>
      %192 = vector.shape_cast %191 : vector<1x8x8xbf16> to vector<8x8xbf16>
      %193 = vector.shape_cast %190 : vector<8x8xbf16> to vector<1x8x8xbf16>
      tpu.vector_store %arg19[%c2_103, %c0_104, %c0_105], %193 {strides = array<i32>} : memref<4x8x8xbf16, #tpu.memory_space<vmem>>, vector<1x8x8xbf16>,
      %194 = vector.extract_strided_slice %167 {offsets = [0, 24], sizes = [8, 8], strides = [1, 1]} : vector<8x32xbf16> to vector<8x8xbf16>
      %c3_106 = arith.constant 3 : index
      %c0_107 = arith.constant 0 : index
      %c0_108 = arith.constant 0 : index
      %195 = vector.load %arg18[%c3_106, %c0_107, %c0_108] : memref<4x8x8xbf16, #tpu.memory_space<vmem>>, vector<1x8x8xbf16>
      %196 = vector.shape_cast %195 : vector<1x8x8xbf16> to vector<8x8xbf16>
      %197 = vector.shape_cast %194 : vector<8x8xbf16> to vector<1x8x8xbf16>
      tpu.vector_store %arg18[%c3_106, %c0_107, %c0_108], %197 {strides = array<i32>} : memref<4x8x8xbf16, #tpu.memory_space<vmem>>, vector<1x8x8xbf16>,
      %198 = vector.extract_strided_slice %169 {offsets = [0, 24], sizes = [8, 8], strides = [1, 1]} : vector<8x32xbf16> to vector<8x8xbf16>
      %c3_109 = arith.constant 3 : index
      %c0_110 = arith.constant 0 : index
      %c0_111 = arith.constant 0 : index
      %199 = vector.load %arg19[%c3_109, %c0_110, %c0_111] : memref<4x8x8xbf16, #tpu.memory_space<vmem>>, vector<1x8x8xbf16>
      %200 = vector.shape_cast %199 : vector<1x8x8xbf16> to vector<8x8xbf16>
      %201 = vector.shape_cast %198 : vector<8x8xbf16> to vector<1x8x8xbf16>
      tpu.vector_store %arg19[%c3_109, %c0_110, %c0_111], %201 {strides = array<i32>} : memref<4x8x8xbf16, #tpu.memory_space<vmem>>, vector<1x8x8xbf16>,
    } else {
    }
    %c8_i32 = arith.constant 8 : i32
    %3 = arith.muli %arg1, %c8_i32 : i32
    %4 = tpu.assume_multiple %3, 8 : i32
    %c0 = arith.constant 0 : index
    %5 = arith.index_cast %4 : i32 to index
    %c0_1 = arith.constant 0 : index
    %6 = vector.load %arg3[%c0, %5, %c0_1] : memref<1x8x32xf32, #tpu.memory_space<vmem>>, vector<1x8x32xf32>
    %7 = vector.shape_cast %6 : vector<1x8x32xf32> to vector<8x32xf32>
    %8 = arith.index_cast %4 : i32 to index
    %c0_2 = arith.constant 0 : index
    %9 = vector.load %arg17[%8, %c0_2] : memref<8x32xbf16, #tpu.memory_space<vmem>>, vector<8x32xbf16>
    %c0_3 = arith.constant 0 : index
    %c0_4 = arith.constant 0 : index
    %10 = vector.load %arg4[%c0_3, %c0_4] : memref<32x96xbf16, #tpu.memory_space<vmem>>, vector<32x32xbf16>
    %cst = arith.constant dense<0.000000e+00> : vector<8x32xf32>
    %11 = tpu.matmul %9, %10, %cst {dimension_numbers = #tpu.dot_dimension_numbers<[1], [0], [0], [1], [0, 0, 1, 1], [], []>} : vector<8x32xbf16>, vector<32x32xbf16>, vector<8x32xf32> -> vector<8x32xf32>
    %c0_5 = arith.constant 0 : index
    %c0_6 = arith.constant 0 : index
    %12 = vector.load %arg5[%c0_5, %c0_6] : memref<1x96xf32, #tpu.memory_space<vmem>>, vector<1x32xf32>
    %13 = vector.broadcast %12 : vector<1x32xf32> to vector<8x32xf32>
    %14 = arith.addf %11, %13 : vector<8x32xf32>
    %cst_7 = arith.constant 0.353553385 : f32
    %15 = vector.broadcast %cst_7 : f32 to vector<8x32xf32>
    %16 = arith.mulf %14, %15 : vector<8x32xf32>
    %17 = arith.truncf %16 : vector<8x32xf32> to vector<8x32xbf16>
    %18 = vector.extract_strided_slice %17 {offsets = [0, 0], sizes = [8, 8], strides = [1, 1]} : vector<8x32xbf16> to vector<8x8xbf16>
    %c0_8 = arith.constant 0 : index
    %c0_9 = arith.constant 0 : index
    %c0_10 = arith.constant 0 : index
    %19 = vector.load %arg20[%c0_8, %c0_9, %c0_10] : memref<4x8x8xbf16, #tpu.memory_space<vmem>>, vector<1x8x8xbf16>
    %20 = vector.shape_cast %19 : vector<1x8x8xbf16> to vector<8x8xbf16>
    %21 = vector.shape_cast %18 : vector<8x8xbf16> to vector<1x8x8xbf16>
    tpu.vector_store %arg20[%c0_8, %c0_9, %c0_10], %21 {strides = array<i32>} : memref<4x8x8xbf16, #tpu.memory_space<vmem>>, vector<1x8x8xbf16>,
    %22 = vector.extract_strided_slice %17 {offsets = [0, 8], sizes = [8, 8], strides = [1, 1]} : vector<8x32xbf16> to vector<8x8xbf16>
    %c1 = arith.constant 1 : index
    %c0_11 = arith.constant 0 : index
    %c0_12 = arith.constant 0 : index
    %23 = vector.load %arg20[%c1, %c0_11, %c0_12] : memref<4x8x8xbf16, #tpu.memory_space<vmem>>, vector<1x8x8xbf16>
    %24 = vector.shape_cast %23 : vector<1x8x8xbf16> to vector<8x8xbf16>
    %25 = vector.shape_cast %22 : vector<8x8xbf16> to vector<1x8x8xbf16>
    tpu.vector_store %arg20[%c1, %c0_11, %c0_12], %25 {strides = array<i32>} : memref<4x8x8xbf16, #tpu.memory_space<vmem>>, vector<1x8x8xbf16>,
    %26 = vector.extract_strided_slice %17 {offsets = [0, 16], sizes = [8, 8], strides = [1, 1]} : vector<8x32xbf16> to vector<8x8xbf16>
    %c2 = arith.constant 2 : index
    %c0_13 = arith.constant 0 : index
    %c0_14 = arith.constant 0 : index
    %27 = vector.load %arg20[%c2, %c0_13, %c0_14] : memref<4x8x8xbf16, #tpu.memory_space<vmem>>, vector<1x8x8xbf16>
    %28 = vector.shape_cast %27 : vector<1x8x8xbf16> to vector<8x8xbf16>
    %29 = vector.shape_cast %26 : vector<8x8xbf16> to vector<1x8x8xbf16>
    tpu.vector_store %arg20[%c2, %c0_13, %c0_14], %29 {strides = array<i32>} : memref<4x8x8xbf16, #tpu.memory_space<vmem>>, vector<1x8x8xbf16>,
    %30 = vector.extract_strided_slice %17 {offsets = [0, 24], sizes = [8, 8], strides = [1, 1]} : vector<8x32xbf16> to vector<8x8xbf16>
    %c3 = arith.constant 3 : index
    %c0_15 = arith.constant 0 : index
    %c0_16 = arith.constant 0 : index
    %31 = vector.load %arg20[%c3, %c0_15, %c0_16] : memref<4x8x8xbf16, #tpu.memory_space<vmem>>, vector<1x8x8xbf16>
    %32 = vector.shape_cast %31 : vector<1x8x8xbf16> to vector<8x8xbf16>
    %33 = vector.shape_cast %30 : vector<8x8xbf16> to vector<1x8x8xbf16>
    tpu.vector_store %arg20[%c3, %c0_15, %c0_16], %33 {strides = array<i32>} : memref<4x8x8xbf16, #tpu.memory_space<vmem>>, vector<1x8x8xbf16>,
    %34 = tpu.iota {dimensions = array<i32: 2>} : vector<1x1x8xi32>
    %35 = arith.index_cast %arg0 : i32 to index
    %36 = memref.load %arg2[%35] : memref<2xi32, #tpu.memory_space<smem>>
    %37 = vector.broadcast %36 : i32 to vector<1x1x8xi32>
    %38 = arith.cmpi slt, %34, %37 : vector<1x1x8xi32>
    %cst_17 = arith.constant 0.000000e+00 : f32
    %cst_18 = arith.constant -1.000000e+09 : f32
    %39 = vector.broadcast %cst_17 : f32 to vector<1x1x8xf32>
    %40 = vector.broadcast %cst_18 : f32 to vector<1x1x8xf32>
    %41 = arith.select %38, %39, %40 : vector<1x1x8xi1>, vector<1x1x8xf32>
    %c0_19 = arith.constant 0 : index
    %c0_20 = arith.constant 0 : index
    %c0_21 = arith.constant 0 : index
    %42 = vector.load %arg20[%c0_19, %c0_20, %c0_21] : memref<4x8x8xbf16, #tpu.memory_space<vmem>>, vector<4x8x8xbf16>
    %c0_22 = arith.constant 0 : index
    %c0_23 = arith.constant 0 : index
    %c0_24 = arith.constant 0 : index
    %43 = vector.load %arg18[%c0_22, %c0_23, %c0_24] : memref<4x8x8xbf16, #tpu.memory_space<vmem>>, vector<4x8x8xbf16>
    "tpu.trace_start"() <{level = 10 : i32, message = "hqd,hkd->hqk"}> : () -> ()
    %cst_25 = arith.constant dense<0.000000e+00> : vector<4x8x8xf32>
    %44 = tpu.matmul %42, %43, %cst_25 {dimension_numbers = #tpu.dot_dimension_numbers<[2], [2], [1], [1], [0, 0, 0, 1, 1, 1], [0], [0]>} : vector<4x8x8xbf16>, vector<4x8x8xbf16>, vector<4x8x8xf32> -> vector<4x8x8xf32>
    "tpu.trace_stop"() : () -> ()
    %45 = vector.broadcast %41 : vector<1x1x8xf32> to vector<4x8x8xf32>
    %46 = arith.addf %44, %45 : vector<4x8x8xf32>
    %cst_26 = arith.constant dense<0xFF800000> : vector<4x8xf32>
    %47 = vector.multi_reduction <maximumf>, %46, %cst_26 [2] : vector<4x8x8xf32> to vector<4x8xf32>
    %48 = vector.shape_cast %47 : vector<4x8xf32> to vector<4x8x1xf32>
    %49 = vector.broadcast %48 : vector<4x8x1xf32> to vector<4x8x8xf32>
    %50 = arith.subf %46, %49 : vector<4x8x8xf32>
    %51 = math.exp %50 : vector<4x8x8xf32>
    %cst_27 = arith.constant dense<0.000000e+00> : vector<4x8xf32>
    %52 = vector.multi_reduction <add>, %51, %cst_27 [2] : vector<4x8x8xf32> to vector<4x8xf32>
    %53 = vector.shape_cast %52 : vector<4x8xf32> to vector<4x8x1xf32>
    %54 = tpu.reciprocal %53 {approx = true} : vector<4x8x1xf32> -> vector<4x8x1xf32>
    %55 = vector.broadcast %54 : vector<4x8x1xf32> to vector<4x8x8xf32>
    %56 = arith.mulf %51, %55 : vector<4x8x8xf32>
    %57 = arith.truncf %56 : vector<4x8x8xf32> to vector<4x8x8xbf16>
    %c0_28 = arith.constant 0 : index
    %c0_29 = arith.constant 0 : index
    %c0_30 = arith.constant 0 : index
    %58 = vector.load %arg19[%c0_28, %c0_29, %c0_30] : memref<4x8x8xbf16, #tpu.memory_space<vmem>>, vector<4x8x8xbf16>
    "tpu.trace_start"() <{level = 10 : i32, message = "hqk,hkd->hqd"}> : () -> ()
    %cst_31 = arith.constant dense<0.000000e+00> : vector<4x8x8xf32>
    %59 = tpu.matmul %57, %58, %cst_31 {dimension_numbers = #tpu.dot_dimension_numbers<[2], [1], [1], [2], [0, 0, 0, 1, 1, 2], [0], [0]>} : vector<4x8x8xbf16>, vector<4x8x8xbf16>, vector<4x8x8xf32> -> vector<4x8x8xf32>
    "tpu.trace_stop"() : () -> ()
    %60 = vector.extract_strided_slice %59 {offsets = [0, 0, 0], sizes = [1, 8, 8], strides = [1, 1, 1]} : vector<4x8x8xf32> to vector<1x8x8xf32>
    %61 = vector.shape_cast %60 : vector<1x8x8xf32> to vector<8x8xf32>
    %c0_32 = arith.constant 0 : index
    %c0_33 = arith.constant 0 : index
    %62 = vector.load %arg21[%c0_32, %c0_33] : memref<8x32xf32, #tpu.memory_space<vmem>>, vector<8x8xf32>
    tpu.vector_store %arg21[%c0_32, %c0_33], %61 {strides = array<i32>} : memref<8x32xf32, #tpu.memory_space<vmem>>, vector<8x8xf32>,
    %63 = vector.extract_strided_slice %59 {offsets = [1, 0, 0], sizes = [1, 8, 8], strides = [1, 1, 1]} : vector<4x8x8xf32> to vector<1x8x8xf32>
    %64 = vector.shape_cast %63 : vector<1x8x8xf32> to vector<8x8xf32>
    %c0_34 = arith.constant 0 : index
    %c8 = arith.constant 8 : index
    %65 = vector.load %arg21[%c0_34, %c8] : memref<8x32xf32, #tpu.memory_space<vmem>>, vector<8x8xf32>
    tpu.vector_store %arg21[%c0_34, %c8], %64 {strides = array<i32>} : memref<8x32xf32, #tpu.memory_space<vmem>>, vector<8x8xf32>,
    %66 = vector.extract_strided_slice %59 {offsets = [2, 0, 0], sizes = [1, 8, 8], strides = [1, 1, 1]} : vector<4x8x8xf32> to vector<1x8x8xf32>
    %67 = vector.shape_cast %66 : vector<1x8x8xf32> to vector<8x8xf32>
    %c0_35 = arith.constant 0 : index
    %c16 = arith.constant 16 : index
    %68 = vector.load %arg21[%c0_35, %c16] : memref<8x32xf32, #tpu.memory_space<vmem>>, vector<8x8xf32>
    tpu.vector_store %arg21[%c0_35, %c16], %67 {strides = array<i32>} : memref<8x32xf32, #tpu.memory_space<vmem>>, vector<8x8xf32>,
    %69 = vector.extract_strided_slice %59 {offsets = [3, 0, 0], sizes = [1, 8, 8], strides = [1, 1, 1]} : vector<4x8x8xf32> to vector<1x8x8xf32>
    %70 = vector.shape_cast %69 : vector<1x8x8xf32> to vector<8x8xf32>
    %c0_36 = arith.constant 0 : index
    %c24 = arith.constant 24 : index
    %71 = vector.load %arg21[%c0_36, %c24] : memref<8x32xf32, #tpu.memory_space<vmem>>, vector<8x8xf32>
    tpu.vector_store %arg21[%c0_36, %c24], %70 {strides = array<i32>} : memref<8x32xf32, #tpu.memory_space<vmem>>, vector<8x8xf32>,
    %c0_37 = arith.constant 0 : index
    %c0_38 = arith.constant 0 : index
    %72 = vector.load %arg21[%c0_37, %c0_38] : memref<8x32xf32, #tpu.memory_space<vmem>>, vector<8x32xf32>
    %73 = arith.truncf %72 : vector<8x32xf32> to vector<8x32xbf16>
    %c0_39 = arith.constant 0 : index
    %c0_40 = arith.constant 0 : index
    %74 = vector.load %arg6[%c0_39, %c0_40] : memref<32x32xbf16, #tpu.memory_space<vmem>>, vector<32x32xbf16>
    %cst_41 = arith.constant dense<0.000000e+00> : vector<8x32xf32>
    %75 = tpu.matmul %73, %74, %cst_41 {dimension_numbers = #tpu.dot_dimension_numbers<[1], [0], [0], [1], [0, 0, 1, 1], [], []>} : vector<8x32xbf16>, vector<32x32xbf16>, vector<8x32xf32> -> vector<8x32xf32>
    %c0_42 = arith.constant 0 : index
    %c0_43 = arith.constant 0 : index
    %76 = vector.load %arg7[%c0_42, %c0_43] : memref<1x32xf32, #tpu.memory_space<vmem>>, vector<1x32xf32>
    %77 = vector.broadcast %76 : vector<1x32xf32> to vector<8x32xf32>
    %78 = arith.addf %75, %77 : vector<8x32xf32>
    %79 = arith.addf %7, %78 : vector<8x32xf32>
    %c0_44 = arith.constant 0 : index
    %c0_45 = arith.constant 0 : index
    %80 = vector.load %arg10[%c0_44, %c0_45] : memref<1x32xf32, #tpu.memory_space<vmem>>, vector<1x32xf32>
    %c0_46 = arith.constant 0 : index
    %c0_47 = arith.constant 0 : index
    %81 = vector.load %arg11[%c0_46, %c0_47] : memref<1x32xf32, #tpu.memory_space<vmem>>, vector<1x32xf32>
    %cst_48 = arith.constant dense<0.000000e+00> : vector<8xf32>
    %82 = vector.multi_reduction <add>, %79, %cst_48 [1] : vector<8x32xf32> to vector<8xf32>
    %83 = vector.shape_cast %82 : vector<8xf32> to vector<8x1xf32>
    %cst_49 = arith.constant 3.200000e+01 : f32
    %84 = vector.broadcast %cst_49 : f32 to vector<8x1xf32>
    %85 = arith.divf %83, %84 : vector<8x1xf32>
    %86 = vector.broadcast %85 : vector<8x1xf32> to vector<8x32xf32>
    %87 = arith.subf %79, %86 : vector<8x32xf32>
    %88 = arith.mulf %87, %87 : vector<8x32xf32>
    %cst_50 = arith.constant dense<0.000000e+00> : vector<8xf32>
    %89 = vector.multi_reduction <add>, %88, %cst_50 [1] : vector<8x32xf32> to vector<8xf32>
    %90 = vector.shape_cast %89 : vector<8xf32> to vector<8x1xf32>
    %cst_51 = arith.constant 3.100000e+01 : f32
    %91 = vector.broadcast %cst_51 : f32 to vector<8x1xf32>
    %92 = arith.divf %90, %91 : vector<8x1xf32>
    %93 = vector.broadcast %85 : vector<8x1xf32> to vector<8x32xf32>
    %94 = arith.subf %79, %93 : vector<8x32xf32>
    %95 = vector.broadcast %80 : vector<1x32xf32> to vector<8x32xf32>
    %96 = arith.mulf %95, %94 : vector<8x32xf32>
    %97 = math.sqrt %92 : vector<8x1xf32>
    %cst_52 = arith.constant 9.99999997E-7 : f32
    %98 = vector.broadcast %cst_52 : f32 to vector<8x1xf32>
    %99 = arith.addf %97, %98 : vector<8x1xf32>
    %100 = vector.broadcast %99 : vector<8x1xf32> to vector<8x32xf32>
    %101 = arith.divf %96, %100 : vector<8x32xf32>
    %102 = vector.broadcast %81 : vector<1x32xf32> to vector<8x32xf32>
    %103 = arith.addf %101, %102 : vector<8x32xf32>
    %104 = arith.truncf %103 : vector<8x32xf32> to vector<8x32xbf16>
    %c0_53 = arith.constant 0 : index
    %c0_54 = arith.constant 0 : index
    %105 = vector.load %arg12[%c0_53, %c0_54] : memref<32x128xbf16, #tpu.memory_space<vmem>>, vector<32x128xbf16>
    %cst_55 = arith.constant dense<0.000000e+00> : vector<8x128xf32>
    %106 = tpu.matmul %104, %105, %cst_55 {dimension_numbers = #tpu.dot_dimension_numbers<[1], [0], [0], [1], [0, 0, 1, 1], [], []>} : vector<8x32xbf16>, vector<32x128xbf16>, vector<8x128xf32> -> vector<8x128xf32>
    %c0_56 = arith.constant 0 : index
    %c0_57 = arith.constant 0 : index
    %107 = vector.load %arg13[%c0_56, %c0_57] : memref<1x128xf32, #tpu.memory_space<vmem>>, vector<1x128xf32>
    %108 = vector.broadcast %107 : vector<1x128xf32> to vector<8x128xf32>
    %109 = arith.addf %106, %108 : vector<8x128xf32>
    %cst_58 = arith.constant 5.000000e-01 : f32
    %110 = vector.broadcast %cst_58 : f32 to vector<8x128xf32>
    %111 = arith.mulf %110, %109 : vector<8x128xf32>
    %112 = arith.mulf %109, %109 : vector<8x128xf32>
    %113 = arith.mulf %109, %112 : vector<8x128xf32>
    %cst_59 = arith.constant 4.471500e-02 : f32
    %114 = vector.broadcast %cst_59 : f32 to vector<8x128xf32>
    %115 = arith.mulf %114, %113 : vector<8x128xf32>
    %116 = arith.addf %109, %115 : vector<8x128xf32>
    %cst_60 = arith.constant 0.797884583 : f32
    %117 = vector.broadcast %cst_60 : f32 to vector<8x128xf32>
    %118 = arith.mulf %117, %116 : vector<8x128xf32>
    %119 = math.tanh %118 : vector<8x128xf32>
    %cst_61 = arith.constant 1.000000e+00 : f32
    %120 = vector.broadcast %cst_61 : f32 to vector<8x128xf32>
    %121 = arith.addf %120, %119 : vector<8x128xf32>
    %122 = arith.mulf %111, %121 : vector<8x128xf32>
    %123 = arith.truncf %122 : vector<8x128xf32> to vector<8x128xbf16>
    %c0_62 = arith.constant 0 : index
    %c0_63 = arith.constant 0 : index
    %124 = vector.load %arg14[%c0_62, %c0_63] : memref<128x32xbf16, #tpu.memory_space<vmem>>, vector<128x32xbf16>
    %cst_64 = arith.constant dense<0.000000e+00> : vector<8x32xf32>
    %125 = tpu.matmul %123, %124, %cst_64 {dimension_numbers = #tpu.dot_dimension_numbers<[1], [0], [0], [1], [0, 0, 1, 1], [], []>} : vector<8x128xbf16>, vector<128x32xbf16>, vector<8x32xf32> -> vector<8x32xf32>
    %c0_65 = arith.constant 0 : index
    %c0_66 = arith.constant 0 : index
    %126 = vector.load %arg15[%c0_65, %c0_66] : memref<1x32xf32, #tpu.memory_space<vmem>>, vector<1x32xf32>
    %127 = vector.broadcast %126 : vector<1x32xf32> to vector<8x32xf32>
    %128 = arith.addf %125, %127 : vector<8x32xf32>
    %129 = arith.addf %79, %128 : vector<8x32xf32>
    %c0_67 = arith.constant 0 : index
    %c0_68 = arith.constant 0 : index
    %c0_69 = arith.constant 0 : index
    %130 = vector.load %arg16[%c0_67, %c0_68, %c0_69] : memref<1x8x32xf32, #tpu.memory_space<vmem>>, vector<1x8x32xf32>
    %131 = vector.shape_cast %130 : vector<1x8x32xf32> to vector<8x32xf32>
    %132 = vector.shape_cast %129 : vector<8x32xf32> to vector<1x8x32xf32>
    tpu.vector_store %arg16[%c0_67, %c0_68, %c0_69], %132 {strides = array<i32>} : memref<1x8x32xf32, #tpu.memory_space<vmem>>, vector<1x8x32xf32>,
    return
  }
  func.func @transform_0(%arg0: i32, %arg1: i32, %arg2: memref<2xi32, #tpu.memory_space<smem>>) -> (i32, i32, i32) {
    %c0_i32 = arith.constant 0 : i32
    %c0_i32_0 = arith.constant 0 : i32
    %c0_i32_1 = arith.constant 0 : i32
    return %arg0, %c0_i32, %c0_i32_0 : i32, i32, i32
  }
  func.func @transform_1(%arg0: i32, %arg1: i32, %arg2: memref<2xi32, #tpu.memory_space<smem>>) -> (i32, i32) {
    %c0_i32 = arith.constant 0 : i32
    %c0_i32_0 = arith.constant 0 : i32
    %c0_i32_1 = arith.constant 0 : i32
    return %c0_i32, %c0_i32_0 : i32, i32
  }
  func.func @transform_2(%arg0: i32, %arg1: i32, %arg2: memref<2xi32, #tpu.memory_space<smem>>) -> (i32, i32) {
    %c0_i32 = arith.constant 0 : i32
    %c0_i32_0 = arith.constant 0 : i32
    %c0_i32_1 = arith.constant 0 : i32
    return %c0_i32, %c0_i32_0 : i32, i32
  }
  func.func @transform_3(%arg0: i32, %arg1: i32, %arg2: memref<2xi32, #tpu.memory_space<smem>>) -> (i32, i32) {
    %c0_i32 = arith.constant 0 : i32
    %c0_i32_0 = arith.constant 0 : i32
    %c0_i32_1 = arith.constant 0 : i32
    return %c0_i32, %c0_i32_0 : i32, i32
  }
  func.func @transform_4(%arg0: i32, %arg1: i32, %arg2: memref<2xi32, #tpu.memory_space<smem>>) -> (i32, i32) {
    %c0_i32 = arith.constant 0 : i32
    %c0_i32_0 = arith.constant 0 : i32
    %c0_i32_1 = arith.constant 0 : i32
    return %c0_i32, %c0_i32_0 : i32, i32
  }
  func.func @transform_5(%arg0: i32, %arg1: i32, %arg2: memref<2xi32, #tpu.memory_space<smem>>) -> (i32, i32) {
    %c0_i32 = arith.constant 0 : i32
    %c0_i32_0 = arith.constant 0 : i32
    %c0_i32_1 = arith.constant 0 : i32
    return %c0_i32, %c0_i32_0 : i32, i32
  }
  func.func @transform_6(%arg0: i32, %arg1: i32, %arg2: memref<2xi32, #tpu.memory_space<smem>>) -> (i32, i32) {
    %c0_i32 = arith.constant 0 : i32
    %c0_i32_0 = arith.constant 0 : i32
    %c0_i32_1 = arith.constant 0 : i32
    return %c0_i32, %c0_i32_0 : i32, i32
  }
  func.func @transform_7(%arg0: i32, %arg1: i32, %arg2: memref<2xi32, #tpu.memory_space<smem>>) -> (i32, i32) {
    %c0_i32 = arith.constant 0 : i32
    %c0_i32_0 = arith.constant 0 : i32
    %c0_i32_1 = arith.constant 0 : i32
    return %c0_i32, %c0_i32_0 : i32, i32
  }
  func.func @transform_8(%arg0: i32, %arg1: i32, %arg2: memref<2xi32, #tpu.memory_space<smem>>) -> (i32, i32) {
    %c0_i32 = arith.constant 0 : i32
    %c0_i32_0 = arith.constant 0 : i32
    %c0_i32_1 = arith.constant 0 : i32
    return %c0_i32, %c0_i32_0 : i32, i32
  }
  func.func @transform_9(%arg0: i32, %arg1: i32, %arg2: memref<2xi32, #tpu.memory_space<smem>>) -> (i32, i32) {
    %c0_i32 = arith.constant 0 : i32
    %c0_i32_0 = arith.constant 0 : i32
    %c0_i32_1 = arith.constant 0 : i32
    return %c0_i32, %c0_i32_0 : i32, i32
  }
  func.func @transform_10(%arg0: i32, %arg1: i32, %arg2: memref<2xi32, #tpu.memory_space<smem>>) -> (i32, i32) {
    %c0_i32 = arith.constant 0 : i32
    %c0_i32_0 = arith.constant 0 : i32
    %c0_i32_1 = arith.constant 0 : i32
    return %c0_i32, %c0_i32_0 : i32, i32
  }
  func.func @transform_11(%arg0: i32, %arg1: i32, %arg2: memref<2xi32, #tpu.memory_space<smem>>) -> (i32, i32) {
    %c0_i32 = arith.constant 0 : i32
    %c0_i32_0 = arith.constant 0 : i32
    %c0_i32_1 = arith.constant 0 : i32
    return %c0_i32, %c0_i32_0 : i32, i32
  }
  func.func @transform_12(%arg0: i32, %arg1: i32, %arg2: memref<2xi32, #tpu.memory_space<smem>>) -> (i32, i32) {
    %c0_i32 = arith.constant 0 : i32
    %c0_i32_0 = arith.constant 0 : i32
    %c0_i32_1 = arith.constant 0 : i32
    return %c0_i32, %c0_i32_0 : i32, i32
  }
  func.func @transform_13(%arg0: i32, %arg1: i32, %arg2: memref<2xi32, #tpu.memory_space<smem>>) -> (i32, i32, i32) {
    %c0_i32 = arith.constant 0 : i32
    %c0_i32_0 = arith.constant 0 : i32
    return %arg0, %arg1, %c0_i32 : i32, i32, i32
  }
}

</mosaic_0001>

<bundles_post_ra>
// kernel: tpu_custom_call.1
= control target key start
LH: loop header
LB: loop body
LE: loop exit
PB: predicated region body
PF: predicated region fallthrough
CT: control target
= control target key end

     0   :  { %s2345_s0 = inlined_call_operand.vmem [shape: s32[2], index: 0, kind: input, shape index: {}]   ;;  %s2346_s1 = inlined_call_operand.vmem [shape: f32[2,8,32], index: 1, kind: input, shape index: {}]   ;;  %s2347_s2 = inlined_call_operand.vmem [shape: bf16[32,96], index: 2, kind: input, shape index: {}]   ;;  %s2348_s3 = inlined_call_operand.vmem [shape: f32[1,96], index: 3, kind: input, shape index: {}]   ;;  %s2349_s4 = inlined_call_operand.vmem [shape: bf16[32,32], index: 4, kind: input, shape index: {}]   ;;  %s2350_s5 = inlined_call_operand.vmem [shape: f32[1,32], index: 5, kind: input, shape index: {}]   ;;  %s2351_s6 = inlined_call_operand.vmem [shape: f32[1,32], index: 6, kind: input, shape index: {}]   ;;  %s2352_s7 = inlined_call_operand.vmem [shape: f32[1,32], index: 7, kind: input, shape index: {}]   ;;  %s2353_s8 = inlined_call_operand.vmem [shape: f32[1,32], index: 8, kind: input, shape index: {}]   ;;  %s2354_s9 = inlined_call_operand.vmem [shape: f32[1,32], index: 9, kind: input, shape index: {}]   ;;  %s2355_s10 = inlined_call_operand.vmem [shape: bf16[32,128], index: 10, kind: input, shape index: {}]   ;;  %s2356_s11 = inlined_call_operand.vmem [shape: f32[1,128], index: 11, kind: input, shape index: {}]   ;;  %s2357_s12 = inlined_call_operand.vmem [shape: bf16[128,32], index: 12, kind: input, shape index: {}]   ;;  %s2358_s13 = inlined_call_operand.vmem [shape: f32[1,32], index: 13, kind: input, shape index: {}]   ;;  %s2359_s14 = inlined_call_operand.hbm [shape: f32[2,8,32], index: 14, kind: output, shape index: {}]  }
   0x1   :  { %2362 = sst [smem:[#allocation15_spill]] %s2346_s1  ;;  %s19_s15 = sshll.u32 %s2345_s0, 4  ;;  %s20_s15 = int_to_ptr.vmem [resolvable:$true] %s19_s15 }
   0x2   :  { %2363 = sst [smem:[#allocation16_spill]] %s2347_s2  ;;  %s1853_s16 = scalar_lea.vmem %s20_s15, 16 }
   0x3   :  { %p1854_p0 = scmp.ne.s32.totalorder %s20_s15, %s1853_s16  ;;  %p1858_p1 = scmp.lt.s32.totalorder %s20_s15, %s20_s15 }
   0x4   :  { %p1859_p2 = scmp.lt.s32.totalorder %s1853_s16, %s1853_s16 }
   0x6   :  { %p1860_p3 = por %p1859_p2, %p1858_p1 }
   0x8   :  { %p1861_p4 = pnand %p1860_p3, %p1854_p0 }
   0xa   :  { %1864 = shalt.err (!%p1861_p4)  }
   0xb   :  { %s1947_s17 = smov [#allocation8]  }
   0xc   :  { %22 = dma.vmem_to_smem %s20_s15, 16, %s1947_s17, [#allocation7] }
   0xd   :  { %1917 = dma.done.wait [#allocation7], 16 }
   0xe   :  { %1918 = vsyncadd [#allocation7], 4294967280 }
   0xf   :  { %24 = sfence }
  0x10   :  { %25 = vsyncpa [#allocation10], 0 }
  0x11   :  { %27 = vsyncpa [#allocation10 + $0x1], 0  ;;  %s2040_s18 = smov 0   ;;  %s2042_s19 = smov 0  }
  0x12   :  { %s2044_s0 = smov 0   ;;  %s2046_s20 = smov 0  }
  0x13   :  { %s2048_s21 = smov 0   ;;  %s2050_s22 = smov 0  }
  0x14 LB: > { %2364 = sst [smem:[#allocation13_spill]] %s1941_s21  ;;  %s1553_s23 = sadd.s32 4294967295, %s1945_s22   ;;  %s1945_s22 = sphi %s2050_s22, %s33_s22   ;;  %s1941_s21 = sphi %s2048_s21, %s2371_s21   ;;  %s1937_s20 = sphi %s2046_s20, %s2370_s20   ;;  %s1933_s0 = sphi %s2044_s0, %s2374_s0   ;;  %s1929_s19 = sphi %s2042_s19, %s2373_s19   ;;  %s1925_s18 = sphi %s2040_s18, %s2372_s18  }
  0x15   : > { %s1554_s24 = sadd.s32 4294967294, %s1945_s22   ;;  %s45_s25 = sadd.s32 1, %s1941_s21 }
  0x16   : > { %s332_s26 = sadd.s32 1, %s1933_s0  ;;  %p47_p5 = scmp.ge.s32.totalorder %s45_s25, 2 }
  0x17   : > { %p342_p6 = scmp.ne.s32.totalorder %s1933_s0, %s1929_s19  ;;  %p343_p7 = scmp.eq.s32.totalorder %s1553_s23, 1 }
  0x18   : > { %p348_p8 = scmp.ne.s32.totalorder %s1929_s19, %s1925_s18  ;;  %s2376_s25 = smov (%p47_p5, %s45_s25), 0 }
  0x19   : > { %2365 = sst [smem:[#allocation14_spill]] %s2376_s25  ;;  %p2080_p9 = por %p343_p7, %p342_p6 }
  0x1a   : > { %p349_p10 = scmp.eq.s32.totalorder %s1554_s24, 1  ;;  %s327_s28 = ssub.s32 %s1941_s21, %s2376_s25 }
  0x1b   : > { %p1557_p11 = scmp.ge.s32.totalorder %s1945_s22, 1  ;;  %p330_p12 = scmp.eq.s32.totalorder %s327_s28, 0 }
  0x1c   : > { %p2087_p13 = por %p349_p10, %p348_p8  ;;  %p410_p0 = scmp.lt.s32.totalorder %s1945_s22, 3 }
  0x1d   : > { %s2093_s30 = scalar_select %p330_p12, %s1933_s0, %s332_s26  }
  0x1e   : > { %p411_p1 = pnand %p1557_p11, %p410_p0 }
  0x1f   : > { %p453_p2 = scmp.lt.s32.totalorder (!%p411_p1), %s1937_s20, 1  ;;  %vm465_vm0 = vcmask (!%p411_p1), 261120   ;;  %s2368_s1 = sld [smem:[#allocation15_spill]] (!%p411_p1)  ;;  %v1949_v10 = vmov (!%p411_p1), 0.0   ;;  %vm1950_vm1 = vmmov (!%p411_p1), 0   ;;  %vm503_vm4 = vcmask (!%p411_p1), 257024  }
  0x20   : > { %414 = sbr.rel (%p411_p1) target bundleno = 2622 (0xa3e), region = 72  ;;  %s2369_s2 = sld [smem:[#allocation16_spill]] (!%p411_p1)  ;;  %1642 = vmatprep.subr.bf16.mxu1 (!%p411_p1), %v1949_v10  ;;  %1646 = vmatprep.mubr.msk.bf16.mxu1 (!%p411_p1), %vm1950_vm1, %v1949_v10  ;;  %v1562_v12 = vld [vmem:[%s2348_s3] ss:$0 sm:$0xff] (!%p411_p1)  ;;  %vm578_vm5 = vcmask (!%p411_p1), 60416   ;;  %vm728_vm6 = vcmask (!%p411_p1), 64512   ;;  %v714_v63 = vlaneseq (!%p411_p1) }
  0x21   : > { %s1948_s25 = smov (!%p411_p1), 96   ;;  %1670 = vmatprep.subr.bf16.mxu0 (!%p411_p1), %v1949_v10  ;;  %1672 = vmatprep.mubr.msk.bf16.mxu0 (!%p411_p1), %vm1950_vm1, %v1949_v10  ;;  %v1560_v21 = vld [vmem:[%s2351_s6] ss:$0 sm:$0xff] (!%p411_p1)  ;;  %s1951_s17 = smov (!%p411_p1), 120   ;;  %vm968_vm8 = vcmask (!%p411_p1), 1043456   ;;  %vm1155_vm9 = vcmask (!%p411_p1), 130112  }
  0x22   : > { %v1561_v24 = vld [vmem:[%s2352_s7] ss:$0 sm:$0xff] (!%p411_p1)  ;;  %s1952_s23 = smov (!%p411_p1), 112   ;;  %s716_s26 = sld [smem:[#allocation8 + %s1937_s20]] (!%p411_p1)  ;;  %vm1161_vm10 = vcmask (!%p411_p1), 195712   ;;  %vm1167_vm11 = vcmask (!%p411_p1), 261312  }
  0x23   : > { %s1956_s28 = smov (!%p411_p1), 72  }
  0x26   : > { %v1811_v2 = vld [vmem:[%s2369_s2] sm:$0xff] (!%p411_p1)   ;;  %v1812_v3 = vld [vmem:[%s2369_s2 + $0x8] sm:$0xff] (!%p411_p1)  }
  0x27   : > { %s454_s15 = scalar_select %p453_p2, %s1937_s20, 1  ;;  %525 = vrot.lane.b32.xlu1 %v1811_v2, %s1948_s25  ;;  %v1813_v27 = vld [vmem:[%s2369_s2] sm:$0xff]   ;;  %v1814_v29 = vld [vmem:[%s2369_s2 + $0x8] sm:$0xff]  }
  0x28   : > { %v717_v2 = vstv %s716_s26  ;;  %s1959_s26 = smov 8  }
  0x29   : > { %s1559_s16 = sshll.u32 %s454_s15, 3  ;;  %s1957_s15 = smov 88  }
  0x2a   : > { %s456_s24 = scalar_lea.vmem %s2368_s1, %s1559_s16  ;;  %s1961_s16 = smov [#allocation9]  }
  0x2b   : > { %v2100_v0 = vld [vmem:[%s456_s24] sm:$0xff]  ;;  %527 = vrot.lane.b32.xlu1 %v1812_v3, %s1948_s25  ;;  %s1953_s24 = smov 104   ;;  %v1954_v3 = vmov -1e+09  }
  0x2c   : > { %v466_v1 = vsel %vm465_vm0, %v2100_v0, 0.0 }
  0x2d   : > { %467 = vadd.xlane.f32.xlu0 %v466_v1  ;;  %v715_v1 = vand.u32 127, %v714_v63 }
  0x2f   : > { %vm718_vm7 = vcmp.lt.s32.totalorder %v715_v1, %v717_v2 }
  0x99   : > { %v526_v9 = vpop.permute.xlu1 %525 }
  0x9a   : > { %1643 = vmatpush3.bf16.msra.mxu1 %v526_v9 }
  0x9b   : > { %1644 = vmatprep.subr.bf16.mxu1 %v1949_v10 }
  0x9d   : > { %v528_v11 = vpop.permute.xlu1 %527 }
  0x9e   : > { %1645 = vmatpush3.bf16.msra.mxu1 %v528_v11 }
  0x9f   : > { %1650 = vmatprep.subr.bf16.mxu1 %v1949_v10 }
  0xba   : > { %v468_v4 = vpop.xlane.xlu0 %467 }
  0xbb   : > { %v470_v5 = vmul.f32 0.03125, %v468_v4  ;;  %v719_v4 = vsel %vm718_vm7, 0.0, %v1954_v3 }
  0xbd   : > { %v471_v6 = vsub.f32 %v2100_v0, %v470_v5 }
  0xbf   : > { %v472_v7 = vmul.f32 %v471_v6, %v471_v6  ;;  %v484_v22 = vmul.f32 %v1560_v21, %v471_v6 }
  0xc1   : > { %v473_v8 = vsel %vm465_vm0, %v472_v7, 0.0 }
  0xc2   : > { %474 = vadd.xlane.f32.xlu0 %v473_v8 }
  0xd8   : > { %531 = vrot.lane.b32.xlu0 %v1562_v12, %s1948_s25 }
 0x14f   : > { %v475_v13 = vpop.xlane.xlu0 %474 }
 0x150   : > { %v477_v14 = vmul.f32 0.032258064, %v475_v13 }
 0x152   : > { %1827 = vrsqrt.f32 %v477_v14  ;;  %vm487_vm2 = vcmp.eq.f32.partialorder %v477_v14, inf  ;;  %v490_v17 = vand.u32 2147483648, %v477_v14  ;;  %vm489_vm3 = vcmp.eq.f32.partialorder %v477_v14, 0.0 }
 0x153   : > { %v532_v31 = vpop.permute.xlu0 %531 }
 0x15c   : > { %v1828_v15 = vpop.eup %1827 }
 0x15d   : > { %v486_v16 = vmul.f32 %v1828_v15, %v477_v14 }
 0x15f   : > { %v488_v18 = vsel %vm487_vm2, %v477_v14, %v486_v16 }
 0x160   : > { %v491_v19 = vsel %vm489_vm3, %v490_v17, %v488_v18 }
 0x161   : > { %v492_v20 = vadd.f32 1e-06, %v491_v19 }
 0x163   : > { %1829 = vrcp.f32 %v492_v20 }
 0x16d   : > { %v1830_v23 = vpop.eup %1829 }
 0x16e   : > { %v494_v25 = vmul.f32 %v1830_v23, %v484_v22 }
 0x170   : > { %v501_v26 = vadd.f32 %v1561_v24, %v494_v25 }
 0x172   : > { %v502_v28 = vpack.c.bf16 %v501_v26, %v501_v26 }
 0x174   : > { %504 = vst.msk [vmem:[#allocation2] sm:$0xf] %vm503_vm4, %v502_v28  ;;  %1647 = vmatmul.mubr.msk.bf16.vlgmr.msra.gmra.mrb[0].mxu1 %vm465_vm0, %v502_v28 }
 0x175   : > { %1651 = vmatpush3.bf16.msra.mxu1 %v1813_v27  ;;  %1654 = vmatprep.mubr.msk.bf16.mxu1 %vm1950_vm1, %v1949_v10 }
 0x176   : > { %1652 = vmatprep.subr.bf16.mxu1 %v1949_v10 }
 0x179   : > { %1653 = vmatpush3.bf16.msra.mxu1 %v1814_v29 }
 0x17a   : > { %1658 = vmatprep.subr.bf16.mxu1 %v1949_v10 }
 0x17b   : > { %v624_v30 = vld [vmem:[#allocation2] sm:$0xf] }
 0x17c   : > { %1655 = vmatmul.mubr.msk.bf16.vlgmr.msra.gmra.mrb[4].mxu1 %vm465_vm0, %v624_v30 }
 0x17d   : > { %1660 = vmatprep.mubr.msk.bf16.mxu1 %vm1950_vm1, %v1949_v10 }
 0x247   : > { %v571_v32 = vpop.f32.mrb[0].mxu1 }
 0x248   : > { %v572_v33 = vadd.f32 %v571_v32, %v532_v31  ;;  %v1648_v34 = vpop.f32.mrb[1].mxu1 }
 0x249   : > { %v574_v35 = vpop.f32.mrb[2].mxu1 }
 0x24a   : > { %v2146_v36 = vpack.c.bf16 %v572_v33, %v572_v33  ;;  %v1649_v37 = vpop.f32.mrb[3].mxu1 }
 0x24c   : > { %579 = vst.msk [vmem:[#allocation3] sm:$0xf] %vm578_vm5, %v2146_v36  ;;  %587 = vrot.lane.b32.xlu1 %v2146_v36, %s1951_s17 }
 0x24f   : > { %v686_v38 = vpop.f32.mrb[4].mxu1 }
 0x250   : > { %v687_v39 = vadd.f32 %v1562_v12, %v686_v38  ;;  %v1656_v40 = vpop.f32.mrb[5].mxu1  ;;  %597 = vrot.lane.b32.xlu1 %v2146_v36, %s1952_s23 }
 0x251   : > { %v689_v41 = vpop.f32.mrb[6].mxu1 }
 0x252   : > { %v692_v42 = vmul.f32 0.35355338, %v687_v39  ;;  %v1657_v43 = vpop.f32.mrb[7].mxu1 }
 0x253   : > { %v724_v44 = vld [vmem:[#allocation3] sm:$0xf] }
 0x254   : > { %v693_v45 = vpack.c.bf16 %v692_v42, %v692_v42  ;;  %607 = vrot.lane.b32.xlu1 %v2146_v36, %s1953_s24  ;;  %v733_v46 = vsel %vm728_vm6, %v724_v44, 0 }
 0x255   : > { %1659 = vmatpush3.bf16.xpose.msra.mxu1 %v733_v46 }
 0x256   : > { %695 = vst.msk [vmem:[#allocation5] sm:$0xf] %vm578_vm5, %v693_v45  ;;  %1664 = vmatprep.subr.bf16.mxu1 %v1949_v10 }
 0x258   : > { %699 = vrot.lane.b32.xlu1 %v693_v45, %s1951_s17  ;;  %s1958_s17 = smov 16  }
 0x25c   : > { %704 = vrot.lane.b32.xlu1 %v693_v45, %s1952_s23  ;;  %s1600_s23 = sshll.u32 %s1937_s20, 7 }
 0x25d   : > { %v720_v47 = vld [vmem:[#allocation5] sm:$0xf]  ;;  %s2297_s1 = scalar_lea.hbm %s2359_s14, %s1600_s23 }
 0x25e   : > { %1661 = vmatmul.mubr.msk.bf16.vlgmr.msra.gmra.mrb[8].mxu1 %vm728_vm6, %v720_v47 }
 0x25f   : > { %1666 = vmatprep.mubr.msk.bf16.mxu1 %vm1950_vm1, %v1949_v10 }
 0x260   : > { %709 = vrot.lane.b32.xlu1 %v693_v45, %s1953_s24 }
 0x2be   : > { %v588_v48 = vpop.permute.xlu1 %587 }
 0x2bf   : > { %591 = vst.msk [vmem:[#allocation3 + $0x4] sm:$0xf] %vm578_vm5, %v588_v48 }
 0x2c2   : > { %v598_v49 = vpop.permute.xlu1 %597 }
 0x2c3   : > { %601 = vst.msk [vmem:[#allocation3 + $0x8] sm:$0xf] %vm578_vm5, %v598_v49 }
 0x2c6   : > { %v608_v50 = vpop.permute.xlu1 %607  ;;  %v725_v51 = vld [vmem:[#allocation3 + $0x4] sm:$0xf] }
 0x2c7   : > { %611 = vst.msk [vmem:[#allocation3 + $0xc] sm:$0xf] %vm578_vm5, %v608_v50  ;;  %v779_v52 = vsel %vm728_vm6, %v725_v51, 0 }
 0x2c8   : > { %1665 = vmatpush3.bf16.xpose.msra.mxu1 %v779_v52 }
 0x2c9   : > { %1676 = vmatprep.subr.bf16.mxu1 %v1949_v10 }
 0x2ca   : > { %v700_v53 = vpop.permute.xlu1 %699  ;;  %v726_v54 = vld [vmem:[#allocation3 + $0x8] sm:$0xf] }
 0x2cb   : > { %703 = vst.msk [vmem:[#allocation5 + $0x4] sm:$0xf] %vm578_vm5, %v700_v53  ;;  %v825_v55 = vsel %vm728_vm6, %v726_v54, 0 }
 0x2cc   : > { %1671 = vmatpush3.bf16.xpose.msra.mxu0 %v825_v55 }
 0x2cd   : > { %1682 = vmatprep.subr.bf16.mxu0 %v1949_v10 }
 0x2ce   : > { %v705_v56 = vpop.permute.xlu1 %704  ;;  %v727_v57 = vld [vmem:[#allocation3 + $0xc] sm:$0xf] }
 0x2cf   : > { %708 = vst.msk [vmem:[#allocation5 + $0x8] sm:$0xf] %vm578_vm5, %v705_v56  ;;  %v871_v60 = vsel %vm728_vm6, %v727_v57, 0 }
 0x2d2   : > { %v710_v58 = vpop.permute.xlu1 %709  ;;  %v721_v59 = vld [vmem:[#allocation5 + $0x4] sm:$0xf] }
 0x2d3   : > { %713 = vst.msk [vmem:[#allocation5 + $0xc] sm:$0xf] %vm578_vm5, %v710_v58  ;;  %1667 = vmatmul.mubr.msk.bf16.vlgmr.msra.gmra.mrb[12].mxu1 %vm728_vm6, %v721_v59 }
 0x2d4   : > { %1677 = vmatpush3.bf16.xpose.msra.mxu1 %v871_v60  ;;  %1678 = vmatprep.mubr.msk.bf16.mxu1 %vm1950_vm1, %v1949_v10 }
 0x2d5   : > { %1688 = vmatprep.subr.bf16.mxu1 %v1949_v10 }
 0x2d6   : > { %v722_v61 = vld [vmem:[#allocation5 + $0x8] sm:$0xf] }
 0x2d7   : > { %1673 = vmatmul.mubr.msk.bf16.vlgmr.msra.gmra.mrb[0].mxu0 %vm728_vm6, %v722_v61 }
 0x2d8   : > { %1684 = vmatprep.mubr.msk.bf16.mxu0 %vm1950_vm1, %v1949_v10 }
 0x2da   : > { %v723_v62 = vld [vmem:[#allocation5 + $0xc] sm:$0xf] }
 0x2db   : > { %1679 = vmatmul.mubr.msk.bf16.vlgmr.msra.gmra.mrb[16].mxu1 %vm728_vm6, %v723_v62 }
 0x2dc   : > { %1690 = vmatprep.mubr.msk.bf16.mxu1 %vm1950_vm1, %v1949_v10 }
 0x331   : > { %v769_v5 = vpop.f32.mrb[8].mxu1 }
 0x332   : > { %v770_v6 = vadd.f32 %v769_v5, %v719_v4  ;;  %v1662_v7 = vpop.f32.mrb[9].mxu1 }
 0x333   : > { %v772_v8 = vpop.f32.mrb[10].mxu1 }
 0x334   : > { %v1663_v9 = vpop.f32.mrb[11].mxu1  ;;  %v913_v11 = vsel %vm728_vm6, %v770_v6, -inf }
 0x335   : > { %914 = vmax.xlane.f32.xlu0 %v913_v11 }
 0x3a6   : > { %v815_v12 = vpop.f32.mrb[12].mxu1 }
 0x3a7   : > { %v816_v13 = vadd.f32 %v815_v12, %v719_v4  ;;  %v1668_v14 = vpop.f32.mrb[13].mxu1 }
 0x3a8   : > { %v818_v15 = vpop.f32.mrb[14].mxu1 }
 0x3a9   : > { %v1669_v16 = vpop.f32.mrb[15].mxu1  ;;  %v916_v17 = vsel %vm728_vm6, %v816_v13, -inf }
 0x3aa   : > { %v861_v18 = vpop.f32.mrb[0].mxu0  ;;  %917 = vmax.xlane.f32.xlu1 %v916_v17 }
 0x3ab   : > { %v862_v19 = vadd.f32 %v861_v18, %v719_v4  ;;  %v1674_v20 = vpop.f32.mrb[1].mxu0 }
 0x3ac   : > { %v864_v21 = vpop.f32.mrb[2].mxu0 }
 0x3ad   : > { %v1675_v22 = vpop.f32.mrb[3].mxu0  ;;  %v919_v23 = vsel %vm728_vm6, %v862_v19, -inf  ;;  %v1815_v21 = vld [vmem:[%s2349_s4] sm:$0xff]  }
 0x3ae   : > { %920 = vmax.xlane.f32.xlu0 %v919_v23  ;;  %v907_v24 = vpop.f32.mrb[16].mxu1 }
 0x3af   : > { %v908_v25 = vadd.f32 %v907_v24, %v719_v4  ;;  %v1680_v26 = vpop.f32.mrb[17].mxu1  ;;  %v1816_v24 = vld [vmem:[%s2349_s4 + $0x8] sm:$0xff]  }
 0x3b0   : > { %v910_v27 = vpop.f32.mrb[18].mxu1 }
 0x3b1   : > { %v1681_v28 = vpop.f32.mrb[19].mxu1  ;;  %v922_v29 = vsel %vm728_vm6, %v908_v25, -inf }
 0x3b2   : > { %923 = vmax.xlane.f32.xlu0 %v922_v29 }
 0x3bb   : > { %583 = vrot.lane.b32.xlu1 %v2146_v36, %s1948_s25  ;;  %s1955_s25 = smov 80  }
 0x3c2   : > { %v915_v30 = vpop.xlane.xlu0 %914 }
 0x3c3   : > { %v925_v31 = vsub.f32 %v770_v6, %v915_v30 }
 0x3c5   : > { %v929_v32 = vmul.f32 1.442695, %v925_v31 }
 0x3c7   : > { %1831 = vpow2.f32 %v929_v32 }
 0x3d1   : > { %v1832_v33 = vpop.eup %1831 }
 0x3d2   : > { %v937_v34 = vsel %vm728_vm6, %v1832_v33, 0.0 }
 0x3df   : > { %938 = vadd.xlane.f32.xlu1 %v937_v34 }
 0x437   : > { %v918_v35 = vpop.xlane.xlu1 %917 }
 0x438   : > { %v926_v37 = vsub.f32 %v816_v13, %v918_v35 }
 0x43a   : > { %v931_v38 = vmul.f32 1.442695, %v926_v37 }
 0x43b   : > { %v921_v39 = vpop.xlane.xlu0 %920  ;;  %v584_v40 = vpop.permute.xlu1 %583 }
 0x43c   : > { %1833 = vpow2.f32 %v931_v38  ;;  %v927_v41 = vsub.f32 %v862_v19, %v921_v39  ;;  %586 = vst.msk [vmem:[#allocation4] sm:$0xf] %vm578_vm5, %v584_v40  ;;  %v1580_v40 = vld [vmem:[%s2350_s5] ss:$0 sm:$0xff] }
 0x43e   : > { %v933_v42 = vmul.f32 1.442695, %v927_v41 }
 0x43f   : > { %v924_v43 = vpop.xlane.xlu0 %923 }
 0x440   : > { %1835 = vpow2.f32 %v933_v42  ;;  %v928_v44 = vsub.f32 %v908_v25, %v924_v43 }
 0x442   : > { %v935_v45 = vmul.f32 1.442695, %v928_v44 }
 0x443   : > { %v961_v46 = vld [vmem:[#allocation4] sm:$0xf] }
 0x444   : > { %1837 = vpow2.f32 %v935_v45  ;;  %v970_v47 = vsel %vm968_vm8, %v961_v46, 0 }
 0x445   : > { %1683 = vmatpush3.bf16.msra.mxu0 %v970_v47 }
 0x446   : > { %v1834_v48 = vpop.eup %1833  ;;  %1694 = vmatprep.subr.bf16.mxu0 %v1949_v10 }
 0x447   : > { %v940_v49 = vsel %vm728_vm6, %v1834_v48, 0.0 }
 0x448   : > { %941 = vadd.xlane.f32.xlu0 %v940_v49 }
 0x44a   : > { %v1836_v50 = vpop.eup %1835 }
 0x44b   : > { %v943_v51 = vsel %vm728_vm6, %v1836_v50, 0.0 }
 0x44c   : > { %944 = vadd.xlane.f32.xlu1 %v943_v51 }
 0x44e   : > { %v1838_v52 = vpop.eup %1837 }
 0x44f   : > { %v946_v53 = vsel %vm728_vm6, %v1838_v52, 0.0 }
 0x450   : > { %947 = vadd.xlane.f32.xlu0 %v946_v53  ;;  %v1817_v53 = vld [vmem:[%s2355_s10] sm:$0xff]  }
 0x45d   : > { %602 = vrot.lane.b32.xlu1 %v2146_v36, %s1955_s25  ;;  %s1960_s25 = smov 24  }
 0x461   : > { %612 = vrot.lane.b32.xlu1 %v2146_v36, %s1956_s28 }
 0x466   : > { %592 = vrot.lane.b32.xlu0 %v2146_v36, %s1957_s15  ;;  %s450_s15 = sand.u32 1, %s1929_s19  }
 0x467   : > { %s1558_s21 = sshll.u32 %s450_s15, 3  ;;  %s1467_s20 = scalar_lea.sflag [#allocation10], %s450_s15 }
 0x468   : > { %s452_s24 = scalar_lea.vmem [#allocation9], %s1558_s21 }
 0x46c   : > { %v939_v54 = vpop.xlane.xlu1 %938 }
 0x46d   : > { %1839 = vrcp.f32 %v939_v54  ;;  %v1819_v54 = vld [vmem:[%s2357_s12] sm:$0xff]  }
 0x477   : > { %v1840_v55 = vpop.eup %1839 }
 0x478   : > { %v953_v56 = vmul.f32 %v1840_v55, %v1832_v33 }
 0x47a   : > { %v957_v57 = vpack.c.bf16 %v953_v56, %v953_v56 }
 0x47c   : > { %1685 = vmatmul.mubr.msk.bf16.vlgmr.msra.gmra.mrb[4].mxu0 %vm728_vm6, %v957_v57 }
 0x47d   : > { %1696 = vmatprep.mubr.msk.bf16.mxu0 %vm1950_vm1, %v1949_v10 }
 0x4d5   : > { %v942_v58 = vpop.xlane.xlu0 %941 }
 0x4d9   : > { %v945_v59 = vpop.xlane.xlu1 %944 }
 0x4da   : > { %1841 = vrcp.f32 %v945_v59 }
 0x4db   : > { %1843 = vrcp.f32 %v942_v58 }
 0x4dd   : > { %v603_v60 = vpop.permute.xlu1 %602  ;;  %v948_v61 = vpop.xlane.xlu0 %947 }
 0x4de   : > { %606 = vst.msk [vmem:[#allocation4 + $0x8] sm:$0xf] %vm578_vm5, %v603_v60  ;;  %1845 = vrcp.f32 %v948_v61 }
 0x4e1   : > { %v613_v62 = vpop.permute.xlu1 %612  ;;  %v593_v36 = vpop.permute.xlu0 %592 }
 0x4e2   : > { %616 = vst.msk [vmem:[#allocation4 + $0xc] sm:$0xf] %vm578_vm5, %v613_v62  ;;  %596 = vst.msk [vmem:[#allocation4 + $0x4] sm:$0xf] %vm578_vm5, %v593_v36  ;;  %v1584_v36 = vld [vmem:[%s2353_s8] ss:$0 sm:$0xff] }
 0x4e4   : > { %v1842_v63 = vpop.eup %1841 }
 0x4e5   : > { %v1844_v1 = vpop.eup %1843  ;;  %v955_v2 = vmul.f32 %v1842_v63, %v1836_v50  ;;  %v963_v3 = vld [vmem:[#allocation4 + $0x8] sm:$0xf] }
 0x4e6   : > { %v1062_v4 = vsel %vm968_vm8, %v963_v3, 0  ;;  %v954_v6 = vmul.f32 %v1844_v1, %v1834_v48 }
 0x4e7   : > { %1695 = vmatpush3.bf16.msra.mxu0 %v1062_v4  ;;  %v959_v5 = vpack.c.bf16 %v955_v2, %v955_v2  ;;  %v1585_v2 = vld [vmem:[%s2354_s9] ss:$0 sm:$0xff] }
 0x4e8   : > { %1706 = vmatprep.subr.bf16.mxu0 %v1949_v10  ;;  %v958_v11 = vpack.c.bf16 %v954_v6, %v954_v6  ;;  %v1846_v12 = vpop.eup %1845  ;;  %v1820_v6 = vld [vmem:[%s2357_s12 + $0x8] sm:$0xff]  }
 0x4e9   : > { %v962_v7 = vld [vmem:[#allocation4 + $0x4] sm:$0xf]  ;;  %v964_v9 = vld [vmem:[#allocation4 + $0xc] sm:$0xf]  ;;  %v956_v14 = vmul.f32 %v1846_v12, %v1838_v52  ;;  %v1825_v12 = vld [vmem:[%s2357_s12 + $0x30] sm:$0xff]  }
 0x4ea   : > { %1697 = vmatmul.mubr.msk.bf16.vlgmr.msra.gmra.mrb[8].mxu0 %vm728_vm6, %v959_v5  ;;  %v1016_v8 = vsel %vm968_vm8, %v962_v7, 0  ;;  %v1108_v13 = vsel %vm968_vm8, %v964_v9, 0  ;;  %v1821_v7 = vld [vmem:[%s2357_s12 + $0x10] sm:$0xff]   ;;  %v1823_v9 = vld [vmem:[%s2357_s12 + $0x20] sm:$0xff]  }
 0x4eb   : > { %1689 = vmatpush3.bf16.msra.mxu1 %v1016_v8  ;;  %1710 = vmatprep.mubr.msk.bf16.mxu0 %vm1950_vm1, %v1949_v10  ;;  %v960_v15 = vpack.c.bf16 %v956_v14, %v956_v14  ;;  %v1822_v8 = vld [vmem:[%s2357_s12 + $0x18] sm:$0xff]   ;;  %v1586_v14 = vld [vmem:[%s2356_s11] ss:$0 sm:$0xff] }
 0x4ec   : > { %1700 = vmatprep.subr.bf16.mxu1 %v1949_v10  ;;  %1707 = vmatpush3.bf16.msra.mxu0 %v1815_v21 }
 0x4ed   : > { %1708 = vmatprep.subr.bf16.mxu0 %v1949_v10 }
 0x4ee   : > { %1691 = vmatmul.mubr.msk.bf16.vlgmr.msra.gmra.mrb[20].mxu1 %vm728_vm6, %v958_v11  ;;  %v1824_v11 = vld [vmem:[%s2357_s12 + $0x28] sm:$0xff]  }
 0x4ef   : > { %1701 = vmatpush3.bf16.msra.mxu1 %v1108_v13  ;;  %1702 = vmatprep.mubr.msk.bf16.mxu1 %vm1950_vm1, %v1949_v10  ;;  %v1826_v13 = vld [vmem:[%s2357_s12 + $0x38] sm:$0xff]  }
 0x4f0   : > { %1714 = vmatprep.subr.bf16.mxu1 %v1949_v10  ;;  %1709 = vmatpush3.bf16.msra.mxu0 %v1816_v24 }
 0x4f1   : > { %1722 = vmatprep.subr.bf16.mxu0 %v1949_v10 }
 0x4f6   : > { %1703 = vmatmul.mubr.msk.bf16.vlgmr.msra.gmra.mrb[24].mxu1 %vm728_vm6, %v960_v15 }
 0x4f7   : > { %1718 = vmatprep.mubr.msk.bf16.mxu1 %vm1950_vm1, %v1949_v10  ;;  %1715 = vmatpush3.bf16.msra.mxu1 %v1817_v53 }
 0x4f8   : > { %1716 = vmatprep.subr.bf16.mxu1 %v1949_v10 }
 0x54f   : > { %v1006_v16 = vpop.f32.mrb[4].mxu0 }
 0x550   : > { %1150 = vst.msk [vmem:[#allocation6] sm:$0xff] %vm728_vm6, %v1006_v16  ;;  %v1686_v17 = vpop.f32.mrb[5].mxu0 }
 0x551   : > { %v1009_v18 = vpop.f32.mrb[6].mxu0 }
 0x552   : > { %v1687_v19 = vpop.f32.mrb[7].mxu0 }
 0x5bd   : > { %v1098_v20 = vpop.f32.mrb[8].mxu0 }
 0x5be   : > { %1158 = vrot.lane.b32.xlu1 %v1098_v20, %s1958_s17  ;;  %v1698_v22 = vpop.f32.mrb[9].mxu0  ;;  %s1869_s17 = sshll.u32 %s1961_s16, 4  ;;  %s1870_s17 = int_to_ptr.vmem [resolvable:$false] %s1869_s17 }
 0x5bf   : > { %v1101_v23 = vpop.f32.mrb[10].mxu0  ;;  %s1871_s2 = scalar_lea.vmem %s1870_s17, 256 }
 0x5c0   : > { %v1699_v25 = vpop.f32.mrb[11].mxu0 }
 0x5c1   : > { %v1052_v26 = vpop.f32.mrb[20].mxu1 }
 0x5c2   : > { %1152 = vrot.lane.b32.xlu0 %v1052_v26, %s1959_s26  ;;  %v1692_v27 = vpop.f32.mrb[21].mxu1  ;;  %s1481_s26 = sshll.u32 %s452_s24, 4  ;;  %s2299_s26 = int_to_ptr.vmem [resolvable:$true] %s1481_s26 }
 0x5c3   : > { %v1055_v28 = vpop.f32.mrb[22].mxu1  ;;  %s1865_s21 = scalar_lea.vmem %s2299_s26, 128  ;;  %p1872_p6 = scmp.lt.s32.totalorder %s2299_s26, %s1870_s17 }
 0x5c4   : > { %v1693_v29 = vpop.f32.mrb[23].mxu1  ;;  %p1866_p3 = scmp.ne.s32.totalorder %s2299_s26, %s1865_s21  ;;  %p1873_p7 = scmp.lt.s32.totalorder %s1871_s2, %s1865_s21 }
 0x5c5   : > { %v1590_v29 = vld [vmem:[%s2358_s13] ss:$0 sm:$0xff] }
 0x5c6   : > { %p1867_p4 = pnand %p1866_p3, %p2080_p9  ;;  %p1874_p8 = por %p1873_p7, %p1872_p6 }
 0x5c8   : > { %p1868_p5 = pneg %p1867_p4 }
 0x5c9   : > { %v1144_v30 = vpop.f32.mrb[24].mxu1 }
 0x5ca   : > { %1164 = vrot.lane.b32.xlu0 %v1144_v30, %s1960_s25  ;;  %v1704_v31 = vpop.f32.mrb[25].mxu1  ;;  %p1875_p10 = pnand %p1874_p8, %p1868_p5 }
 0x5cb   : > { %v1147_v32 = vpop.f32.mrb[26].mxu1 }
 0x5cc   : > { %v1705_v33 = vpop.f32.mrb[27].mxu1 }
 0x630   : > { %v1159_v35 = vpop.permute.xlu1 %1158 }
 0x634   : > { %v1153_v34 = vpop.permute.xlu0 %1152 }
 0x635   : > { %1156 = vst.msk [vmem:[#allocation6] sm:$0xff] %vm1155_vm9, %v1153_v34 }
 0x636   : > { %1162 = vst.msk [vmem:[#allocation6] sm:$0xff] %vm1161_vm10, %v1159_v35 }
 0x63c   : > { %v1165_v37 = vpop.permute.xlu0 %1164 }
 0x63d   : > { %1168 = vst.msk [vmem:[#allocation6] sm:$0xff] %vm1167_vm11, %v1165_v37 }
 0x644   : > { %v1169_v38 = vld [vmem:[#allocation6] sm:$0xff] }
 0x645   : > { %v1170_v39 = vpack.c.bf16 %v1169_v38, %v1169_v38 }
 0x647   : > { %1711 = vmatmul.mubr.msk.bf16.vlgmr.msra.gmra.mrb[12].mxu0 %vm465_vm0, %v1170_v39 }
 0x648   : > { %1738 = vmatprep.mubr.msk.bf16.mxu0 %vm1950_vm1, %v1949_v10  ;;  %1723 = vmatpush3.bf16.msra.mxu0 %v1819_v54 }
 0x649   : > { %1724 = vmatprep.subr.bf16.mxu0 %v1949_v10 }
 0x64c   : > { %1725 = vmatpush3.bf16.msra.mxu0 %v1820_v6 }
 0x64d   : > { %1726 = vmatprep.subr.bf16.mxu0 %v1949_v10 }
 0x650   : > { %1727 = vmatpush3.bf16.msra.mxu0 %v1821_v7 }
 0x651   : > { %1728 = vmatprep.subr.bf16.mxu0 %v1949_v10 }
 0x654   : > { %1729 = vmatpush3.bf16.msra.mxu0 %v1822_v8 }
 0x655   : > { %1730 = vmatprep.subr.bf16.mxu0 %v1949_v10 }
 0x658   : > { %1731 = vmatpush3.bf16.msra.mxu0 %v1823_v9 }
 0x659   : > { %1732 = vmatprep.subr.bf16.mxu0 %v1949_v10 }
 0x65c   : > { %1733 = vmatpush3.bf16.msra.mxu0 %v1824_v11 }
 0x65d   : > { %1734 = vmatprep.subr.bf16.mxu0 %v1949_v10 }
 0x660   : > { %1735 = vmatpush3.bf16.msra.mxu0 %v1825_v12 }
 0x661   : > { %1736 = vmatprep.subr.bf16.mxu0 %v1949_v10 }
 0x664   : > { %1737 = vmatpush3.bf16.msra.mxu0 %v1826_v13 }
 0x71a   : > { %v1231_v41 = vpop.f32.mrb[12].mxu0 }
 0x71b   : > { %v1232_v42 = vadd.f32 %v1580_v40, %v1231_v41  ;;  %v1712_v43 = vpop.f32.mrb[13].mxu0 }
 0x71c   : > { %v1234_v44 = vpop.f32.mrb[14].mxu0 }
 0x71d   : > { %v2234_v45 = vadd.f32 %v1232_v42, %v2100_v0  ;;  %v1713_v46 = vpop.f32.mrb[15].mxu0  ;;  %v1818_v0 = vld [vmem:[%s2355_s10 + $0x8] sm:$0xff]  }
 0x71e   : > { %1717 = vmatpush3.bf16.msra.mxu1 %v1818_v0 }
 0x71f   : > { %v1240_v47 = vsel %vm465_vm0, %v2234_v45, 0.0 }
 0x720   : > { %1241 = vadd.xlane.f32.xlu1 %v1240_v47 }
 0x7ad   : > { %v1242_v48 = vpop.xlane.xlu1 %1241 }
 0x7ae   : > { %v1244_v49 = vmul.f32 0.03125, %v1242_v48 }
 0x7b0   : > { %v1245_v50 = vsub.f32 %v2234_v45, %v1244_v49 }
 0x7b2   : > { %v1246_v51 = vmul.f32 %v1245_v50, %v1245_v50  ;;  %v1258_v63 = vmul.f32 %v1584_v36, %v1245_v50 }
 0x7b4   : > { %v1247_v52 = vsel %vm465_vm0, %v1246_v51, 0.0 }
 0x7b5   : > { %1248 = vadd.xlane.f32.xlu0 %v1247_v52 }
 0x842   : > { %v1249_v55 = vpop.xlane.xlu0 %1248 }
 0x843   : > { %v1251_v56 = vmul.f32 0.032258064, %v1249_v55 }
 0x845   : > { %1847 = vrsqrt.f32 %v1251_v56  ;;  %vm1261_vm12 = vcmp.eq.f32.partialorder %v1251_v56, inf  ;;  %v1264_v59 = vand.u32 2147483648, %v1251_v56  ;;  %vm1263_vm13 = vcmp.eq.f32.partialorder %v1251_v56, 0.0 }
 0x84f   : > { %v1848_v57 = vpop.eup %1847 }
 0x850   : > { %v1260_v58 = vmul.f32 %v1848_v57, %v1251_v56 }
 0x852   : > { %v1262_v60 = vsel %vm1261_vm12, %v1251_v56, %v1260_v58 }
 0x853   : > { %v1265_v61 = vsel %vm1263_vm13, %v1264_v59, %v1262_v60 }
 0x854   : > { %v1266_v62 = vadd.f32 1e-06, %v1265_v61 }
 0x856   : > { %1849 = vrcp.f32 %v1266_v62 }
 0x860   : > { %v1850_v1 = vpop.eup %1849 }
 0x861   : > { %v1268_v3 = vmul.f32 %v1850_v1, %v1258_v63 }
 0x863   : > { %v1275_v4 = vadd.f32 %v1585_v2, %v1268_v3 }
 0x865   : > { %v1276_v5 = vpack.c.bf16 %v1275_v4, %v1275_v4 }
 0x867   : > { %1719 = vmatmul.mubr.msk.bf16.vlgmr.msra.gmra.mrb[28].mxu1 %vm465_vm0, %v1276_v5 }
 0x93a   : > { %v1337_v15 = vpop.f32.mrb[28].mxu1 }
 0x93b   : > { %v1338_v16 = vadd.f32 %v1586_v14, %v1337_v15  ;;  %v1720_v17 = vpop.f32.mrb[29].mxu1 }
 0x93c   : > { %v1340_v18 = vpop.f32.mrb[30].mxu1 }
 0x93d   : > { %v1344_v19 = vmul.f32 %v1338_v16, %v1338_v16  ;;  %v1721_v20 = vpop.f32.mrb[31].mxu1  ;;  %v1343_v10 = vmul.f32 0.5, %v1338_v16 }
 0x93f   : > { %v1345_v21 = vmul.f32 %v1344_v19, %v1338_v16 }
 0x941   : > { %v1346_v22 = vmul.f32 0.044715, %v1345_v21 }
 0x943   : > { %v1347_v23 = vadd.f32 %v1346_v22, %v1338_v16 }
 0x945   : > { %v1348_v24 = vmul.f32 0.7978846, %v1347_v23 }
 0x947   : > { %1851 = vtanh.f32 %v1348_v24 }
 0x951   : > { %v1852_v25 = vpop.eup %1851 }
 0x952   : > { %v1350_v26 = vadd.f32 1.0, %v1852_v25 }
 0x954   : > { %v1351_v27 = vmul.f32 %v1350_v26, %v1343_v10 }
 0x956   : > { %v1352_v28 = vpack.c.bf16 %v1351_v27, %v1351_v27 }
 0x958   : > { %1739 = vmatmul.mubr.bf16.vlgmr.msra.gmra.mrb[16].mxu0 %v1352_v28 }
 0xa2b   : > { %v1458_v30 = vpop.f32.mrb[16].mxu0 }
 0xa2c   : > { %v1459_v31 = vadd.f32 %v1590_v29, %v1458_v30  ;;  %v1740_v32 = vpop.f32.mrb[17].mxu0 }
 0xa2d   : > { %v1461_v33 = vpop.f32.mrb[18].mxu0 }
 0xa2e   : > { %v1464_v34 = vadd.f32 %v1459_v31, %v2234_v45  ;;  %v1741_v35 = vpop.f32.mrb[19].mxu0 }
 0xa30   : > { %1465 = vst.msk [vmem:[%s452_s24] sm:$0xff] %vm465_vm0, %v1464_v34 }
 0xa31   : > { %1878 = shalt.err (!%p1875_p10)
}
 0xa32   : > { %s1879_s15 = scalar_lea.hbm %s2297_s1, 128  ;;  %s1883_s25 = scalar_lea.hbm %s2359_s14, 256 }
 0xa33   : > { %p1880_p11 = scmp.ne.s32.totalorder %s2297_s1, %s1879_s15  ;;  %p1884_p1 = scmp.lt.u32.totalorder %s2297_s1, %s2359_s14 }
 0xa34   : > { %p1885_p2 = scmp.lt.u32.totalorder %s1883_s25, %s1879_s15  ;;  %p1887_p4 = scmp.lt.u32.totalorder %s1879_s15, %s2297_s1 }
 0xa35   : > { %p1881_p12 = pnand %p1880_p11, %p2080_p9 }
 0xa36   : > { %p1886_p3 = por %p1885_p2, %p1884_p1 }
 0xa37   : > { %p1882_p0 = pneg %p1881_p12 }
 0xa38   : > { %p1888_p5 = por %p1887_p4, %p1886_p3 }
 0xa3a   : > { %p1889_p6 = pnand %p1888_p5, %p1882_p0 }
 0xa3c   : > { %1892 = shalt.err (!%p1889_p6)
}
 0xa3d   : > { %1742 = dma.vmem_to_hbm [thread:$0]  (%p2080_p9), %s2299_s26, 128, %s2297_s1, %s1467_s20  }
 0xa3e PF: > { %p1748_p7 = scmp.ge.s32.totalorder %s1945_s22, 2  ;;  %s1493_s2 = sand.u32 1, %s1925_s18  }
 0xa3f   : > { %s1494_s21 = scalar_lea.sflag [#allocation10], %s1493_s2 }
 0xa40   : > { %p1745_p8 = pnand %p1748_p7, %p2087_p13 }
 0xa42   : > { %1920 = dma.done.wait (!%p1745_p8), %s1494_s21, 128  }
 0xa43   : > { %1922 = vsyncadd (!%p1745_p8), %s1494_s21, 4294967168  ;;  %s33_s22 = sadd.s32 1, %s1945_s22   ;;  %s2370_s20 = sld [smem:[#allocation13_spill]] }
 0xa44   : > { %p30_p10 = scmp.ge.s32.totalorder %s33_s22, 4   ;;  %s2371_s21 = sld [smem:[#allocation14_spill]] }
 0xa45   : > { %s2372_s18 = smov %s1929_s19  ;;  %s2373_s19 = smov %s1933_s0 }
 0xa46   : > { %s2374_s0 = smov %s2093_s30  ;;  %32 = sbr.rel (!%p30_p10) target bundleno = 20 (0x14), region = 122 }
 0xa4d   :  { %1499 = vsyncpa [#allocation10], 1 }
 0xa4e   :  { %1501 = vsyncpa [#allocation10 + $0x1], 1 }

// kernel: tpu_custom_call.1
= control target key start
LH: loop header
LB: loop body
LE: loop exit
PB: predicated region body
PF: predicated region fallthrough
CT: control target
= control target key end

     0   :  { %s2345_s0 = inlined_call_operand.vmem [shape: s32[2], index: 0, kind: input, shape index: {}]   ;;  %s2346_s1 = inlined_call_operand.vmem [shape: f32[2,8,32], index: 1, kind: input, shape index: {}]   ;;  %s2347_s2 = inlined_call_operand.vmem [shape: bf16[32,96], index: 2, kind: input, shape index: {}]   ;;  %s2348_s3 = inlined_call_operand.vmem [shape: f32[1,96], index: 3, kind: input, shape index: {}]   ;;  %s2349_s4 = inlined_call_operand.vmem [shape: bf16[32,32], index: 4, kind: input, shape index: {}]   ;;  %s2350_s5 = inlined_call_operand.vmem [shape: f32[1,32], index: 5, kind: input, shape index: {}]   ;;  %s2351_s6 = inlined_call_operand.vmem [shape: f32[1,32], index: 6, kind: input, shape index: {}]   ;;  %s2352_s7 = inlined_call_operand.vmem [shape: f32[1,32], index: 7, kind: input, shape index: {}]   ;;  %s2353_s8 = inlined_call_operand.vmem [shape: f32[1,32], index: 8, kind: input, shape index: {}]   ;;  %s2354_s9 = inlined_call_operand.vmem [shape: f32[1,32], index: 9, kind: input, shape index: {}]   ;;  %s2355_s10 = inlined_call_operand.vmem [shape: bf16[32,128], index: 10, kind: input, shape index: {}]   ;;  %s2356_s11 = inlined_call_operand.vmem [shape: f32[1,128], index: 11, kind: input, shape index: {}]   ;;  %s2357_s12 = inlined_call_operand.vmem [shape: bf16[128,32], index: 12, kind: input, shape index: {}]   ;;  %s2358_s13 = inlined_call_operand.vmem [shape: f32[1,32], index: 13, kind: input, shape index: {}]   ;;  %s2359_s14 = inlined_call_operand.hbm [shape: f32[2,8,32], index: 14, kind: output, shape index: {}]  }
   0x1   :  { %2362 = sst [smem:[#allocation15_spill]] %s2346_s1  ;;  %s19_s15 = sshll.u32 %s2345_s0, 4  ;;  %s20_s15 = int_to_ptr.vmem [resolvable:$true] %s19_s15 }
   0x2   :  { %2363 = sst [smem:[#allocation16_spill]] %s2347_s2  ;;  %s1853_s16 = scalar_lea.vmem %s20_s15, 16 }
   0x3   :  { %p1854_p0 = scmp.ne.s32.totalorder %s20_s15, %s1853_s16  ;;  %p1858_p1 = scmp.lt.s32.totalorder %s20_s15, %s20_s15 }
   0x4   :  { %p1859_p2 = scmp.lt.s32.totalorder %s1853_s16, %s1853_s16 }
   0x6   :  { %p1860_p3 = por %p1859_p2, %p1858_p1 }
   0x8   :  { %p1861_p4 = pnand %p1860_p3, %p1854_p0 }
   0xa   :  { %1864 = shalt.err (!%p1861_p4)  }
   0xb   :  { %s1947_s17 = smov [#allocation8]  }
   0xc   :  { %22 = dma.vmem_to_smem %s20_s15, 16, %s1947_s17, [#allocation7] }
   0xd   :  { %1917 = dma.done.wait [#allocation7], 16 }
   0xe   :  { %1918 = vsyncadd [#allocation7], 4294967280 }
   0xf   :  { %24 = sfence }
  0x10   :  { %25 = vsyncpa [#allocation10], 0 }
  0x11   :  { %27 = vsyncpa [#allocation10 + $0x1], 0  ;;  %s2040_s18 = smov 0   ;;  %s2042_s19 = smov 0  }
  0x12   :  { %s2044_s0 = smov 0   ;;  %s2046_s20 = smov 0  }
  0x13   :  { %s2048_s21 = smov 0   ;;  %s2050_s22 = smov 0  }
  0x14 LB: > { %2364 = sst [smem:[#allocation13_spill]] %s1941_s21  ;;  %s1553_s23 = sadd.s32 4294967295, %s1945_s22   ;;  %s1945_s22 = sphi %s2050_s22, %s33_s22   ;;  %s1941_s21 = sphi %s2048_s21, %s2371_s21   ;;  %s1937_s20 = sphi %s2046_s20, %s2370_s20   ;;  %s1933_s0 = sphi %s2044_s0, %s2374_s0   ;;  %s1929_s19 = sphi %s2042_s19, %s2373_s19   ;;  %s1925_s18 = sphi %s2040_s18, %s2372_s18  }
  0x15   : > { %s1554_s24 = sadd.s32 4294967294, %s1945_s22   ;;  %s45_s25 = sadd.s32 1, %s1941_s21 }
  0x16   : > { %s332_s26 = sadd.s32 1, %s1933_s0  ;;  %p47_p5 = scmp.ge.s32.totalorder %s45_s25, 2 }
  0x17   : > { %p342_p6 = scmp.ne.s32.totalorder %s1933_s0, %s1929_s19  ;;  %p343_p7 = scmp.eq.s32.totalorder %s1553_s23, 1 }
  0x18   : > { %p348_p8 = scmp.ne.s32.totalorder %s1929_s19, %s1925_s18  ;;  %s2376_s25 = smov (%p47_p5, %s45_s25), 0 }
  0x19   : > { %2365 = sst [smem:[#allocation14_spill]] %s2376_s25  ;;  %p2080_p9 = por %p343_p7, %p342_p6 }
  0x1a   : > { %p349_p10 = scmp.eq.s32.totalorder %s1554_s24, 1  ;;  %s327_s28 = ssub.s32 %s1941_s21, %s2376_s25 }
  0x1b   : > { %p1557_p11 = scmp.ge.s32.totalorder %s1945_s22, 1  ;;  %p330_p12 = scmp.eq.s32.totalorder %s327_s28, 0 }
  0x1c   : > { %p2087_p13 = por %p349_p10, %p348_p8  ;;  %p410_p0 = scmp.lt.s32.totalorder %s1945_s22, 3 }
  0x1d   : > { %s2093_s30 = scalar_select %p330_p12, %s1933_s0, %s332_s26  }
  0x1e   : > { %p411_p1 = pnand %p1557_p11, %p410_p0 }
  0x1f   : > { %p453_p2 = scmp.lt.s32.totalorder (!%p411_p1), %s1937_s20, 1  ;;  %vm465_vm0 = vcmask (!%p411_p1), 261120   ;;  %s2368_s1 = sld [smem:[#allocation15_spill]] (!%p411_p1)  ;;  %v1949_v10 = vmov (!%p411_p1), 0.0   ;;  %vm1950_vm1 = vmmov (!%p411_p1), 0   ;;  %vm503_vm4 = vcmask (!%p411_p1), 257024  }
  0x20   : > { %414 = sbr.rel (%p411_p1) target bundleno = 2622 (0xa3e), region = 72  ;;  %s2369_s2 = sld [smem:[#allocation16_spill]] (!%p411_p1)  ;;  %1642 = vmatprep.subr.bf16.mxu1 (!%p411_p1), %v1949_v10  ;;  %1646 = vmatprep.mubr.msk.bf16.mxu1 (!%p411_p1), %vm1950_vm1, %v1949_v10  ;;  %v1562_v12 = vld [vmem:[%s2348_s3] ss:$0 sm:$0xff] (!%p411_p1)  ;;  %vm578_vm5 = vcmask (!%p411_p1), 60416   ;;  %vm728_vm6 = vcmask (!%p411_p1), 64512   ;;  %v714_v63 = vlaneseq (!%p411_p1) }
  0x21   : > { %s1948_s25 = smov (!%p411_p1), 96   ;;  %1670 = vmatprep.subr.bf16.mxu0 (!%p411_p1), %v1949_v10  ;;  %1672 = vmatprep.mubr.msk.bf16.mxu0 (!%p411_p1), %vm1950_vm1, %v1949_v10  ;;  %v1560_v21 = vld [vmem:[%s2351_s6] ss:$0 sm:$0xff] (!%p411_p1)  ;;  %s1951_s17 = smov (!%p411_p1), 120   ;;  %vm968_vm8 = vcmask (!%p411_p1), 1043456   ;;  %vm1155_vm9 = vcmask (!%p411_p1), 130112  }
  0x22   : > { %v1561_v24 = vld [vmem:[%s2352_s7] ss:$0 sm:$0xff] (!%p411_p1)  ;;  %s1952_s23 = smov (!%p411_p1), 112   ;;  %s716_s26 = sld [smem:[#allocation8 + %s1937_s20]] (!%p411_p1)  ;;  %vm1161_vm10 = vcmask (!%p411_p1), 195712   ;;  %vm1167_vm11 = vcmask (!%p411_p1), 261312  }
  0x23   : > { %s1956_s28 = smov (!%p411_p1), 72  }
  0x26   : > { %v1811_v2 = vld [vmem:[%s2369_s2] sm:$0xff] (!%p411_p1)   ;;  %v1812_v3 = vld [vmem:[%s2369_s2 + $0x8] sm:$0xff] (!%p411_p1)  }
  0x27   : > { %s454_s15 = scalar_select %p453_p2, %s1937_s20, 1  ;;  %525 = vrot.lane.b32.xlu1 %v1811_v2, %s1948_s25  ;;  %v1813_v27 = vld [vmem:[%s2369_s2] sm:$0xff]   ;;  %v1814_v29 = vld [vmem:[%s2369_s2 + $0x8] sm:$0xff]  }
  0x28   : > { %v717_v2 = vstv %s716_s26  ;;  %s1959_s26 = smov 8  }
  0x29   : > { %s1559_s16 = sshll.u32 %s454_s15, 3  ;;  %s1957_s15 = smov 88  }
  0x2a   : > { %s456_s24 = scalar_lea.vmem %s2368_s1, %s1559_s16  ;;  %s1961_s16 = smov [#allocation9]  }
  0x2b   : > { %v2100_v0 = vld [vmem:[%s456_s24] sm:$0xff]  ;;  %527 = vrot.lane.b32.xlu1 %v1812_v3, %s1948_s25  ;;  %s1953_s24 = smov 104   ;;  %v1954_v3 = vmov -1e+09  }
  0x2c   : > { %v466_v1 = vsel %vm465_vm0, %v2100_v0, 0.0 }
  0x2d   : > { %467 = vadd.xlane.f32.xlu0 %v466_v1  ;;  %v715_v1 = vand.u32 127, %v714_v63 }
  0x2f   : > { %vm718_vm7 = vcmp.lt.s32.totalorder %v715_v1, %v717_v2 }
  0x99   : > { %v526_v9 = vpop.permute.xlu1 %525 }
  0x9a   : > { %1643 = vmatpush3.bf16.msra.mxu1 %v526_v9 }
  0x9b   : > { %1644 = vmatprep.subr.bf16.mxu1 %v1949_v10 }
  0x9d   : > { %v528_v11 = vpop.permute.xlu1 %527 }
  0x9e   : > { %1645 = vmatpush3.bf16.msra.mxu1 %v528_v11 }
  0x9f   : > { %1650 = vmatprep.subr.bf16.mxu1 %v1949_v10 }
  0xba   : > { %v468_v4 = vpop.xlane.xlu0 %467 }
  0xbb   : > { %v470_v5 = vmul.f32 0.03125, %v468_v4  ;;  %v719_v4 = vsel %vm718_vm7, 0.0, %v1954_v3 }
  0xbd   : > { %v471_v6 = vsub.f32 %v2100_v0, %v470_v5 }
  0xbf   : > { %v472_v7 = vmul.f32 %v471_v6, %v471_v6  ;;  %v484_v22 = vmul.f32 %v1560_v21, %v471_v6 }
  0xc1   : > { %v473_v8 = vsel %vm465_vm0, %v472_v7, 0.0 }
  0xc2   : > { %474 = vadd.xlane.f32.xlu0 %v473_v8 }
  0xd8   : > { %531 = vrot.lane.b32.xlu0 %v1562_v12, %s1948_s25 }
 0x14f   : > { %v475_v13 = vpop.xlane.xlu0 %474 }
 0x150   : > { %v477_v14 = vmul.f32 0.032258064, %v475_v13 }
 0x152   : > { %1827 = vrsqrt.f32 %v477_v14  ;;  %vm487_vm2 = vcmp.eq.f32.partialorder %v477_v14, inf  ;;  %v490_v17 = vand.u32 2147483648, %v477_v14  ;;  %vm489_vm3 = vcmp.eq.f32.partialorder %v477_v14, 0.0 }
 0x153   : > { %v532_v31 = vpop.permute.xlu0 %531 }
 0x15c   : > { %v1828_v15 = vpop.eup %1827 }
 0x15d   : > { %v486_v16 = vmul.f32 %v1828_v15, %v477_v14 }
 0x15f   : > { %v488_v18 = vsel %vm487_vm2, %v477_v14, %v486_v16 }
 0x160   : > { %v491_v19 = vsel %vm489_vm3, %v490_v17, %v488_v18 }
 0x161   : > { %v492_v20 = vadd.f32 1e-06, %v491_v19 }
 0x163   : > { %1829 = vrcp.f32 %v492_v20 }
 0x16d   : > { %v1830_v23 = vpop.eup %1829 }
 0x16e   : > { %v494_v25 = vmul.f32 %v1830_v23, %v484_v22 }
 0x170   : > { %v501_v26 = vadd.f32 %v1561_v24, %v494_v25 }
 0x172   : > { %v502_v28 = vpack.c.bf16 %v501_v26, %v501_v26 }
 0x174   : > { %504 = vst.msk [vmem:[#allocation2] sm:$0xf] %vm503_vm4, %v502_v28  ;;  %1647 = vmatmul.mubr.msk.bf16.vlgmr.msra.gmra.mrb[0].mxu1 %vm465_vm0, %v502_v28 }
 0x175   : > { %1651 = vmatpush3.bf16.msra.mxu1 %v1813_v27  ;;  %1654 = vmatprep.mubr.msk.bf16.mxu1 %vm1950_vm1, %v1949_v10 }
 0x176   : > { %1652 = vmatprep.subr.bf16.mxu1 %v1949_v10 }
 0x179   : > { %1653 = vmatpush3.bf16.msra.mxu1 %v1814_v29 }
 0x17a   : > { %1658 = vmatprep.subr.bf16.mxu1 %v1949_v10 }
 0x17b   : > { %v624_v30 = vld [vmem:[#allocation2] sm:$0xf] }
 0x17c   : > { %1655 = vmatmul.mubr.msk.bf16.vlgmr.msra.gmra.mrb[4].mxu1 %vm465_vm0, %v624_v30 }
 0x17d   : > { %1660 = vmatprep.mubr.msk.bf16.mxu1 %vm1950_vm1, %v1949_v10 }
 0x247   : > { %v571_v32 = vpop.f32.mrb[0].mxu1 }
 0x248   : > { %v572_v33 = vadd.f32 %v571_v32, %v532_v31  ;;  %v1648_v34 = vpop.f32.mrb[1].mxu1 }
 0x249   : > { %v574_v35 = vpop.f32.mrb[2].mxu1 }
 0x24a   : > { %v2146_v36 = vpack.c.bf16 %v572_v33, %v572_v33  ;;  %v1649_v37 = vpop.f32.mrb[3].mxu1 }
 0x24c   : > { %579 = vst.msk [vmem:[#allocation3] sm:$0xf] %vm578_vm5, %v2146_v36  ;;  %587 = vrot.lane.b32.xlu1 %v2146_v36, %s1951_s17 }
 0x24f   : > { %v686_v38 = vpop.f32.mrb[4].mxu1 }
 0x250   : > { %v687_v39 = vadd.f32 %v1562_v12, %v686_v38  ;;  %v1656_v40 = vpop.f32.mrb[5].mxu1  ;;  %597 = vrot.lane.b32.xlu1 %v2146_v36, %s1952_s23 }
 0x251   : > { %v689_v41 = vpop.f32.mrb[6].mxu1 }
 0x252   : > { %v692_v42 = vmul.f32 0.35355338, %v687_v39  ;;  %v1657_v43 = vpop.f32.mrb[7].mxu1 }
 0x253   : > { %v724_v44 = vld [vmem:[#allocation3] sm:$0xf] }
 0x254   : > { %v693_v45 = vpack.c.bf16 %v692_v42, %v692_v42  ;;  %607 = vrot.lane.b32.xlu1 %v2146_v36, %s1953_s24  ;;  %v733_v46 = vsel %vm728_vm6, %v724_v44, 0 }
 0x255   : > { %1659 = vmatpush3.bf16.xpose.msra.mxu1 %v733_v46 }
 0x256   : > { %695 = vst.msk [vmem:[#allocation5] sm:$0xf] %vm578_vm5, %v693_v45  ;;  %1664 = vmatprep.subr.bf16.mxu1 %v1949_v10 }
 0x258   : > { %699 = vrot.lane.b32.xlu1 %v693_v45, %s1951_s17  ;;  %s1958_s17 = smov 16  }
 0x25c   : > { %704 = vrot.lane.b32.xlu1 %v693_v45, %s1952_s23  ;;  %s1600_s23 = sshll.u32 %s1937_s20, 7 }
 0x25d   : > { %v720_v47 = vld [vmem:[#allocation5] sm:$0xf]  ;;  %s2297_s1 = scalar_lea.hbm %s2359_s14, %s1600_s23 }
 0x25e   : > { %1661 = vmatmul.mubr.msk.bf16.vlgmr.msra.gmra.mrb[8].mxu1 %vm728_vm6, %v720_v47 }
 0x25f   : > { %1666 = vmatprep.mubr.msk.bf16.mxu1 %vm1950_vm1, %v1949_v10 }
 0x260   : > { %709 = vrot.lane.b32.xlu1 %v693_v45, %s1953_s24 }
 0x2be   : > { %v588_v48 = vpop.permute.xlu1 %587 }
 0x2bf   : > { %591 = vst.msk [vmem:[#allocation3 + $0x4] sm:$0xf] %vm578_vm5, %v588_v48 }
 0x2c2   : > { %v598_v49 = vpop.permute.xlu1 %597 }
 0x2c3   : > { %601 = vst.msk [vmem:[#allocation3 + $0x8] sm:$0xf] %vm578_vm5, %v598_v49 }
 0x2c6   : > { %v608_v50 = vpop.permute.xlu1 %607  ;;  %v725_v51 = vld [vmem:[#allocation3 + $0x4] sm:$0xf] }
 0x2c7   : > { %611 = vst.msk [vmem:[#allocation3 + $0xc] sm:$0xf] %vm578_vm5, %v608_v50  ;;  %v779_v52 = vsel %vm728_vm6, %v725_v51, 0 }
 0x2c8   : > { %1665 = vmatpush3.bf16.xpose.msra.mxu1 %v779_v52 }
 0x2c9   : > { %1676 = vmatprep.subr.bf16.mxu1 %v1949_v10 }
 0x2ca   : > { %v700_v53 = vpop.permute.xlu1 %699  ;;  %v726_v54 = vld [vmem:[#allocation3 + $0x8] sm:$0xf] }
 0x2cb   : > { %703 = vst.msk [vmem:[#allocation5 + $0x4] sm:$0xf] %vm578_vm5, %v700_v53  ;;  %v825_v55 = vsel %vm728_vm6, %v726_v54, 0 }
 0x2cc   : > { %1671 = vmatpush3.bf16.xpose.msra.mxu0 %v825_v55 }
 0x2cd   : > { %1682 = vmatprep.subr.bf16.mxu0 %v1949_v10 }
 0x2ce   : > { %v705_v56 = vpop.permute.xlu1 %704  ;;  %v727_v57 = vld [vmem:[#allocation3 + $0xc] sm:$0xf] }
 0x2cf   : > { %708 = vst.msk [vmem:[#allocation5 + $0x8] sm:$0xf] %vm578_vm5, %v705_v56  ;;  %v871_v60 = vsel %vm728_vm6, %v727_v57, 0 }
 0x2d2   : > { %v710_v58 = vpop.permute.xlu1 %709  ;;  %v721_v59 = vld [vmem:[#allocation5 + $0x4] sm:$0xf] }
 0x2d3   : > { %713 = vst.msk [vmem:[#allocation5 + $0xc] sm:$0xf] %vm578_vm5, %v710_v58  ;;  %1667 = vmatmul.mubr.msk.bf16.vlgmr.msra.gmra.mrb[12].mxu1 %vm728_vm6, %v721_v59 }
 0x2d4   : > { %1677 = vmatpush3.bf16.xpose.msra.mxu1 %v871_v60  ;;  %1678 = vmatprep.mubr.msk.bf16.mxu1 %vm1950_vm1, %v1949_v10 }
 0x2d5   : > { %1688 = vmatprep.subr.bf16.mxu1 %v1949_v10 }
 0x2d6   : > { %v722_v61 = vld [vmem:[#allocation5 + $0x8] sm:$0xf] }
 0x2d7   : > { %1673 = vmatmul.mubr.msk.bf16.vlgmr.msra.gmra.mrb[0].mxu0 %vm728_vm6, %v722_v61 }
 0x2d8   : > { %1684 = vmatprep.mubr.msk.bf16.mxu0 %vm1950_vm1, %v1949_v10 }
 0x2da   : > { %v723_v62 = vld [vmem:[#allocation5 + $0xc] sm:$0xf] }
 0x2db   : > { %1679 = vmatmul.mubr.msk.bf16.vlgmr.msra.gmra.mrb[16].mxu1 %vm728_vm6, %v723_v62 }
 0x2dc   : > { %1690 = vmatprep.mubr.msk.bf16.mxu1 %vm1950_vm1, %v1949_v10 }
 0x331   : > { %v769_v5 = vpop.f32.mrb[8].mxu1 }
 0x332   : > { %v770_v6 = vadd.f32 %v769_v5, %v719_v4  ;;  %v1662_v7 = vpop.f32.mrb[9].mxu1 }
 0x333   : > { %v772_v8 = vpop.f32.mrb[10].mxu1 }
 0x334   : > { %v1663_v9 = vpop.f32.mrb[11].mxu1  ;;  %v913_v11 = vsel %vm728_vm6, %v770_v6, -inf }
 0x335   : > { %914 = vmax.xlane.f32.xlu0 %v913_v11 }
 0x3a6   : > { %v815_v12 = vpop.f32.mrb[12].mxu1 }
 0x3a7   : > { %v816_v13 = vadd.f32 %v815_v12, %v719_v4  ;;  %v1668_v14 = vpop.f32.mrb[13].mxu1 }
 0x3a8   : > { %v818_v15 = vpop.f32.mrb[14].mxu1 }
 0x3a9   : > { %v1669_v16 = vpop.f32.mrb[15].mxu1  ;;  %v916_v17 = vsel %vm728_vm6, %v816_v13, -inf }
 0x3aa   : > { %v861_v18 = vpop.f32.mrb[0].mxu0  ;;  %917 = vmax.xlane.f32.xlu1 %v916_v17 }
 0x3ab   : > { %v862_v19 = vadd.f32 %v861_v18, %v719_v4  ;;  %v1674_v20 = vpop.f32.mrb[1].mxu0 }
 0x3ac   : > { %v864_v21 = vpop.f32.mrb[2].mxu0 }
 0x3ad   : > { %v1675_v22 = vpop.f32.mrb[3].mxu0  ;;  %v919_v23 = vsel %vm728_vm6, %v862_v19, -inf  ;;  %v1815_v21 = vld [vmem:[%s2349_s4] sm:$0xff]  }
 0x3ae   : > { %920 = vmax.xlane.f32.xlu0 %v919_v23  ;;  %v907_v24 = vpop.f32.mrb[16].mxu1 }
 0x3af   : > { %v908_v25 = vadd.f32 %v907_v24, %v719_v4  ;;  %v1680_v26 = vpop.f32.mrb[17].mxu1  ;;  %v1816_v24 = vld [vmem:[%s2349_s4 + $0x8] sm:$0xff]  }
 0x3b0   : > { %v910_v27 = vpop.f32.mrb[18].mxu1 }
 0x3b1   : > { %v1681_v28 = vpop.f32.mrb[19].mxu1  ;;  %v922_v29 = vsel %vm728_vm6, %v908_v25, -inf }
 0x3b2   : > { %923 = vmax.xlane.f32.xlu0 %v922_v29 }
 0x3bb   : > { %583 = vrot.lane.b32.xlu1 %v2146_v36, %s1948_s25  ;;  %s1955_s25 = smov 80  }
 0x3c2   : > { %v915_v30 = vpop.xlane.xlu0 %914 }
 0x3c3   : > { %v925_v31 = vsub.f32 %v770_v6, %v915_v30 }
 0x3c5   : > { %v929_v32 = vmul.f32 1.442695, %v925_v31 }
 0x3c7   : > { %1831 = vpow2.f32 %v929_v32 }
 0x3d1   : > { %v1832_v33 = vpop.eup %1831 }
 0x3d2   : > { %v937_v34 = vsel %vm728_vm6, %v1832_v33, 0.0 }
 0x3df   : > { %938 = vadd.xlane.f32.xlu1 %v937_v34 }
 0x437   : > { %v918_v35 = vpop.xlane.xlu1 %917 }
 0x438   : > { %v926_v37 = vsub.f32 %v816_v13, %v918_v35 }
 0x43a   : > { %v931_v38 = vmul.f32 1.442695, %v926_v37 }
 0x43b   : > { %v921_v39 = vpop.xlane.xlu0 %920  ;;  %v584_v40 = vpop.permute.xlu1 %583 }
 0x43c   : > { %1833 = vpow2.f32 %v931_v38  ;;  %v927_v41 = vsub.f32 %v862_v19, %v921_v39  ;;  %586 = vst.msk [vmem:[#allocation4] sm:$0xf] %vm578_vm5, %v584_v40  ;;  %v1580_v40 = vld [vmem:[%s2350_s5] ss:$0 sm:$0xff] }
 0x43e   : > { %v933_v42 = vmul.f32 1.442695, %v927_v41 }
 0x43f   : > { %v924_v43 = vpop.xlane.xlu0 %923 }
 0x440   : > { %1835 = vpow2.f32 %v933_v42  ;;  %v928_v44 = vsub.f32 %v908_v25, %v924_v43 }
 0x442   : > { %v935_v45 = vmul.f32 1.442695, %v928_v44 }
 0x443   : > { %v961_v46 = vld [vmem:[#allocation4] sm:$0xf] }
 0x444   : > { %1837 = vpow2.f32 %v935_v45  ;;  %v970_v47 = vsel %vm968_vm8, %v961_v46, 0 }
 0x445   : > { %1683 = vmatpush3.bf16.msra.mxu0 %v970_v47 }
 0x446   : > { %v1834_v48 = vpop.eup %1833  ;;  %1694 = vmatprep.subr.bf16.mxu0 %v1949_v10 }
 0x447   : > { %v940_v49 = vsel %vm728_vm6, %v1834_v48, 0.0 }
 0x448   : > { %941 = vadd.xlane.f32.xlu0 %v940_v49 }
 0x44a   : > { %v1836_v50 = vpop.eup %1835 }
 0x44b   : > { %v943_v51 = vsel %vm728_vm6, %v1836_v50, 0.0 }
 0x44c   : > { %944 = vadd.xlane.f32.xlu1 %v943_v51 }
 0x44e   : > { %v1838_v52 = vpop.eup %1837 }
 0x44f   : > { %v946_v53 = vsel %vm728_vm6, %v1838_v52, 0.0 }
 0x450   : > { %947 = vadd.xlane.f32.xlu0 %v946_v53  ;;  %v1817_v53 = vld [vmem:[%s2355_s10] sm:$0xff]  }
 0x45d   : > { %602 = vrot.lane.b32.xlu1 %v2146_v36, %s1955_s25  ;;  %s1960_s25 = smov 24  }
 0x461   : > { %612 = vrot.lane.b32.xlu1 %v2146_v36, %s1956_s28 }
 0x466   : > { %592 = vrot.lane.b32.xlu0 %v2146_v36, %s1957_s15  ;;  %s450_s15 = sand.u32 1, %s1929_s19  }
 0x467   : > { %s1558_s21 = sshll.u32 %s450_s15, 3  ;;  %s1467_s20 = scalar_lea.sflag [#allocation10], %s450_s15 }
 0x468   : > { %s452_s24 = scalar_lea.vmem [#allocation9], %s1558_s21 }
 0x46c   : > { %v939_v54 = vpop.xlane.xlu1 %938 }
 0x46d   : > { %1839 = vrcp.f32 %v939_v54  ;;  %v1819_v54 = vld [vmem:[%s2357_s12] sm:$0xff]  }
 0x477   : > { %v1840_v55 = vpop.eup %1839 }
 0x478   : > { %v953_v56 = vmul.f32 %v1840_v55, %v1832_v33 }
 0x47a   : > { %v957_v57 = vpack.c.bf16 %v953_v56, %v953_v56 }
 0x47c   : > { %1685 = vmatmul.mubr.msk.bf16.vlgmr.msra.gmra.mrb[4].mxu0 %vm728_vm6, %v957_v57 }
 0x47d   : > { %1696 = vmatprep.mubr.msk.bf16.mxu0 %vm1950_vm1, %v1949_v10 }
 0x4d5   : > { %v942_v58 = vpop.xlane.xlu0 %941 }
 0x4d9   : > { %v945_v59 = vpop.xlane.xlu1 %944 }
 0x4da   : > { %1841 = vrcp.f32 %v945_v59 }
 0x4db   : > { %1843 = vrcp.f32 %v942_v58 }
 0x4dd   : > { %v603_v60 = vpop.permute.xlu1 %602  ;;  %v948_v61 = vpop.xlane.xlu0 %947 }
 0x4de   : > { %606 = vst.msk [vmem:[#allocation4 + $0x8] sm:$0xf] %vm578_vm5, %v603_v60  ;;  %1845 = vrcp.f32 %v948_v61 }
 0x4e1   : > { %v613_v62 = vpop.permute.xlu1 %612  ;;  %v593_v36 = vpop.permute.xlu0 %592 }
 0x4e2   : > { %616 = vst.msk [vmem:[#allocation4 + $0xc] sm:$0xf] %vm578_vm5, %v613_v62  ;;  %596 = vst.msk [vmem:[#allocation4 + $0x4] sm:$0xf] %vm578_vm5, %v593_v36  ;;  %v1584_v36 = vld [vmem:[%s2353_s8] ss:$0 sm:$0xff] }
 0x4e4   : > { %v1842_v63 = vpop.eup %1841 }
 0x4e5   : > { %v1844_v1 = vpop.eup %1843  ;;  %v955_v2 = vmul.f32 %v1842_v63, %v1836_v50  ;;  %v963_v3 = vld [vmem:[#allocation4 + $0x8] sm:$0xf] }
 0x4e6   : > { %v1062_v4 = vsel %vm968_vm8, %v963_v3, 0  ;;  %v954_v6 = vmul.f32 %v1844_v1, %v1834_v48 }
 0x4e7   : > { %1695 = vmatpush3.bf16.msra.mxu0 %v1062_v4  ;;  %v959_v5 = vpack.c.bf16 %v955_v2, %v955_v2  ;;  %v1585_v2 = vld [vmem:[%s2354_s9] ss:$0 sm:$0xff] }
 0x4e8   : > { %1706 = vmatprep.subr.bf16.mxu0 %v1949_v10  ;;  %v958_v11 = vpack.c.bf16 %v954_v6, %v954_v6  ;;  %v1846_v12 = vpop.eup %1845  ;;  %v1820_v6 = vld [vmem:[%s2357_s12 + $0x8] sm:$0xff]  }
 0x4e9   : > { %v962_v7 = vld [vmem:[#allocation4 + $0x4] sm:$0xf]  ;;  %v964_v9 = vld [vmem:[#allocation4 + $0xc] sm:$0xf]  ;;  %v956_v14 = vmul.f32 %v1846_v12, %v1838_v52  ;;  %v1825_v12 = vld [vmem:[%s2357_s12 + $0x30] sm:$0xff]  }
 0x4ea   : > { %1697 = vmatmul.mubr.msk.bf16.vlgmr.msra.gmra.mrb[8].mxu0 %vm728_vm6, %v959_v5  ;;  %v1016_v8 = vsel %vm968_vm8, %v962_v7, 0  ;;  %v1108_v13 = vsel %vm968_vm8, %v964_v9, 0  ;;  %v1821_v7 = vld [vmem:[%s2357_s12 + $0x10] sm:$0xff]   ;;  %v1823_v9 = vld [vmem:[%s2357_s12 + $0x20] sm:$0xff]  }
 0x4eb   : > { %1689 = vmatpush3.bf16.msra.mxu1 %v1016_v8  ;;  %1710 = vmatprep.mubr.msk.bf16.mxu0 %vm1950_vm1, %v1949_v10  ;;  %v960_v15 = vpack.c.bf16 %v956_v14, %v956_v14  ;;  %v1822_v8 = vld [vmem:[%s2357_s12 + $0x18] sm:$0xff]   ;;  %v1586_v14 = vld [vmem:[%s2356_s11] ss:$0 sm:$0xff] }
 0x4ec   : > { %1700 = vmatprep.subr.bf16.mxu1 %v1949_v10  ;;  %1707 = vmatpush3.bf16.msra.mxu0 %v1815_v21 }
 0x4ed   : > { %1708 = vmatprep.subr.bf16.mxu0 %v1949_v10 }
 0x4ee   : > { %1691 = vmatmul.mubr.msk.bf16.vlgmr.msra.gmra.mrb[20].mxu1 %vm728_vm6, %v958_v11  ;;  %v1824_v11 = vld [vmem:[%s2357_s12 + $0x28] sm:$0xff]  }
 0x4ef   : > { %1701 = vmatpush3.bf16.msra.mxu1 %v1108_v13  ;;  %1702 = vmatprep.mubr.msk.bf16.mxu1 %vm1950_vm1, %v1949_v10  ;;  %v1826_v13 = vld [vmem:[%s2357_s12 + $0x38] sm:$0xff]  }
 0x4f0   : > { %1714 = vmatprep.subr.bf16.mxu1 %v1949_v10  ;;  %1709 = vmatpush3.bf16.msra.mxu0 %v1816_v24 }
 0x4f1   : > { %1722 = vmatprep.subr.bf16.mxu0 %v1949_v10 }
 0x4f6   : > { %1703 = vmatmul.mubr.msk.bf16.vlgmr.msra.gmra.mrb[24].mxu1 %vm728_vm6, %v960_v15 }
 0x4f7   : > { %1718 = vmatprep.mubr.msk.bf16.mxu1 %vm1950_vm1, %v1949_v10  ;;  %1715 = vmatpush3.bf16.msra.mxu1 %v1817_v53 }
 0x4f8   : > { %1716 = vmatprep.subr.bf16.mxu1 %v1949_v10 }
 0x54f   : > { %v1006_v16 = vpop.f32.mrb[4].mxu0 }
 0x550   : > { %1150 = vst.msk [vmem:[#allocation6] sm:$0xff] %vm728_vm6, %v1006_v16  ;;  %v1686_v17 = vpop.f32.mrb[5].mxu0 }
 0x551   : > { %v1009_v18 = vpop.f32.mrb[6].mxu0 }
 0x552   : > { %v1687_v19 = vpop.f32.mrb[7].mxu0 }
 0x5bd   : > { %v1098_v20 = vpop.f32.mrb[8].mxu0 }
 0x5be   : > { %1158 = vrot.lane.b32.xlu1 %v1098_v20, %s1958_s17  ;;  %v1698_v22 = vpop.f32.mrb[9].mxu0  ;;  %s1869_s17 = sshll.u32 %s1961_s16, 4  ;;  %s1870_s17 = int_to_ptr.vmem [resolvable:$false] %s1869_s17 }
 0x5bf   : > { %v1101_v23 = vpop.f32.mrb[10].mxu0  ;;  %s1871_s2 = scalar_lea.vmem %s1870_s17, 256 }
 0x5c0   : > { %v1699_v25 = vpop.f32.mrb[11].mxu0 }
 0x5c1   : > { %v1052_v26 = vpop.f32.mrb[20].mxu1 }
 0x5c2   : > { %1152 = vrot.lane.b32.xlu0 %v1052_v26, %s1959_s26  ;;  %v1692_v27 = vpop.f32.mrb[21].mxu1  ;;  %s1481_s26 = sshll.u32 %s452_s24, 4  ;;  %s2299_s26 = int_to_ptr.vmem [resolvable:$true] %s1481_s26 }
 0x5c3   : > { %v1055_v28 = vpop.f32.mrb[22].mxu1  ;;  %s1865_s21 = scalar_lea.vmem %s2299_s26, 128  ;;  %p1872_p6 = scmp.lt.s32.totalorder %s2299_s26, %s1870_s17 }
 0x5c4   : > { %v1693_v29 = vpop.f32.mrb[23].mxu1  ;;  %p1866_p3 = scmp.ne.s32.totalorder %s2299_s26, %s1865_s21  ;;  %p1873_p7 = scmp.lt.s32.totalorder %s1871_s2, %s1865_s21 }
 0x5c5   : > { %v1590_v29 = vld [vmem:[%s2358_s13] ss:$0 sm:$0xff] }
 0x5c6   : > { %p1867_p4 = pnand %p1866_p3, %p2080_p9  ;;  %p1874_p8 = por %p1873_p7, %p1872_p6 }
 0x5c8   : > { %p1868_p5 = pneg %p1867_p4 }
 0x5c9   : > { %v1144_v30 = vpop.f32.mrb[24].mxu1 }
 0x5ca   : > { %1164 = vrot.lane.b32.xlu0 %v1144_v30, %s1960_s25  ;;  %v1704_v31 = vpop.f32.mrb[25].mxu1  ;;  %p1875_p10 = pnand %p1874_p8, %p1868_p5 }
 0x5cb   : > { %v1147_v32 = vpop.f32.mrb[26].mxu1 }
 0x5cc   : > { %v1705_v33 = vpop.f32.mrb[27].mxu1 }
 0x630   : > { %v1159_v35 = vpop.permute.xlu1 %1158 }
 0x634   : > { %v1153_v34 = vpop.permute.xlu0 %1152 }
 0x635   : > { %1156 = vst.msk [vmem:[#allocation6] sm:$0xff] %vm1155_vm9, %v1153_v34 }
 0x636   : > { %1162 = vst.msk [vmem:[#allocation6] sm:$0xff] %vm1161_vm10, %v1159_v35 }
 0x63c   : > { %v1165_v37 = vpop.permute.xlu0 %1164 }
 0x63d   : > { %1168 = vst.msk [vmem:[#allocation6] sm:$0xff] %vm1167_vm11, %v1165_v37 }
 0x644   : > { %v1169_v38 = vld [vmem:[#allocation6] sm:$0xff] }
 0x645   : > { %v1170_v39 = vpack.c.bf16 %v1169_v38, %v1169_v38 }
 0x647   : > { %1711 = vmatmul.mubr.msk.bf16.vlgmr.msra.gmra.mrb[12].mxu0 %vm465_vm0, %v1170_v39 }
 0x648   : > { %1738 = vmatprep.mubr.msk.bf16.mxu0 %vm1950_vm1, %v1949_v10  ;;  %1723 = vmatpush3.bf16.msra.mxu0 %v1819_v54 }
 0x649   : > { %1724 = vmatprep.subr.bf16.mxu0 %v1949_v10 }
 0x64c   : > { %1725 = vmatpush3.bf16.msra.mxu0 %v1820_v6 }
 0x64d   : > { %1726 = vmatprep.subr.bf16.mxu0 %v1949_v10 }
 0x650   : > { %1727 = vmatpush3.bf16.msra.mxu0 %v1821_v7 }
 0x651   : > { %1728 = vmatprep.subr.bf16.mxu0 %v1949_v10 }
 0x654   : > { %1729 = vmatpush3.bf16.msra.mxu0 %v1822_v8 }
 0x655   : > { %1730 = vmatprep.subr.bf16.mxu0 %v1949_v10 }
 0x658   : > { %1731 = vmatpush3.bf16.msra.mxu0 %v1823_v9 }
 0x659   : > { %1732 = vmatprep.subr.bf16.mxu0 %v1949_v10 }
 0x65c   : > { %1733 = vmatpush3.bf16.msra.mxu0 %v1824_v11 }
 0x65d   : > { %1734 = vmatprep.subr.bf16.mxu0 %v1949_v10 }
 0x660   : > { %1735 = vmatpush3.bf16.msra.mxu0 %v1825_v12 }
 0x661   : > { %1736 = vmatprep.subr.bf16.mxu0 %v1949_v10 }
 0x664   : > { %1737 = vmatpush3.bf16.msra.mxu0 %v1826_v13 }
 0x71a   : > { %v1231_v41 = vpop.f32.mrb[12].mxu0 }
 0x71b   : > { %v1232_v42 = vadd.f32 %v1580_v40, %v1231_v41  ;;  %v1712_v43 = vpop.f32.mrb[13].mxu0 }
 0x71c   : > { %v1234_v44 = vpop.f32.mrb[14].mxu0 }
 0x71d   : > { %v2234_v45 = vadd.f32 %v1232_v42, %v2100_v0  ;;  %v1713_v46 = vpop.f32.mrb[15].mxu0  ;;  %v1818_v0 = vld [vmem:[%s2355_s10 + $0x8] sm:$0xff]  }
 0x71e   : > { %1717 = vmatpush3.bf16.msra.mxu1 %v1818_v0 }
 0x71f   : > { %v1240_v47 = vsel %vm465_vm0, %v2234_v45, 0.0 }
 0x720   : > { %1241 = vadd.xlane.f32.xlu1 %v1240_v47 }
 0x7ad   : > { %v1242_v48 = vpop.xlane.xlu1 %1241 }
 0x7ae   : > { %v1244_v49 = vmul.f32 0.03125, %v1242_v48 }
 0x7b0   : > { %v1245_v50 = vsub.f32 %v2234_v45, %v1244_v49 }
 0x7b2   : > { %v1246_v51 = vmul.f32 %v1245_v50, %v1245_v50  ;;  %v1258_v63 = vmul.f32 %v1584_v36, %v1245_v50 }
 0x7b4   : > { %v1247_v52 = vsel %vm465_vm0, %v1246_v51, 0.0 }
 0x7b5   : > { %1248 = vadd.xlane.f32.xlu0 %v1247_v52 }
 0x842   : > { %v1249_v55 = vpop.xlane.xlu0 %1248 }
 0x843   : > { %v1251_v56 = vmul.f32 0.032258064, %v1249_v55 }
 0x845   : > { %1847 = vrsqrt.f32 %v1251_v56  ;;  %vm1261_vm12 = vcmp.eq.f32.partialorder %v1251_v56, inf  ;;  %v1264_v59 = vand.u32 2147483648, %v1251_v56  ;;  %vm1263_vm13 = vcmp.eq.f32.partialorder %v1251_v56, 0.0 }
 0x84f   : > { %v1848_v57 = vpop.eup %1847 }
 0x850   : > { %v1260_v58 = vmul.f32 %v1848_v57, %v1251_v56 }
 0x852   : > { %v1262_v60 = vsel %vm1261_vm12, %v1251_v56, %v1260_v58 }
 0x853   : > { %v1265_v61 = vsel %vm1263_vm13, %v1264_v59, %v1262_v60 }
 0x854   : > { %v1266_v62 = vadd.f32 1e-06, %v1265_v61 }
 0x856   : > { %1849 = vrcp.f32 %v1266_v62 }
 0x860   : > { %v1850_v1 = vpop.eup %1849 }
 0x861   : > { %v1268_v3 = vmul.f32 %v1850_v1, %v1258_v63 }
 0x863   : > { %v1275_v4 = vadd.f32 %v1585_v2, %v1268_v3 }
 0x865   : > { %v1276_v5 = vpack.c.bf16 %v1275_v4, %v1275_v4 }
 0x867   : > { %1719 = vmatmul.mubr.msk.bf16.vlgmr.msra.gmra.mrb[28].mxu1 %vm465_vm0, %v1276_v5 }
 0x93a   : > { %v1337_v15 = vpop.f32.mrb[28].mxu1 }
 0x93b   : > { %v1338_v16 = vadd.f32 %v1586_v14, %v1337_v15  ;;  %v1720_v17 = vpop.f32.mrb[29].mxu1 }
 0x93c   : > { %v1340_v18 = vpop.f32.mrb[30].mxu1 }
 0x93d   : > { %v1344_v19 = vmul.f32 %v1338_v16, %v1338_v16  ;;  %v1721_v20 = vpop.f32.mrb[31].mxu1  ;;  %v1343_v10 = vmul.f32 0.5, %v1338_v16 }
 0x93f   : > { %v1345_v21 = vmul.f32 %v1344_v19, %v1338_v16 }
 0x941   : > { %v1346_v22 = vmul.f32 0.044715, %v1345_v21 }
 0x943   : > { %v1347_v23 = vadd.f32 %v1346_v22, %v1338_v16 }
 0x945   : > { %v1348_v24 = vmul.f32 0.7978846, %v1347_v23 }
 0x947   : > { %1851 = vtanh.f32 %v1348_v24 }
 0x951   : > { %v1852_v25 = vpop.eup %1851 }
 0x952   : > { %v1350_v26 = vadd.f32 1.0, %v1852_v25 }
 0x954   : > { %v1351_v27 = vmul.f32 %v1350_v26, %v1343_v10 }
 0x956   : > { %v1352_v28 = vpack.c.bf16 %v1351_v27, %v1351_v27 }
 0x958   : > { %1739 = vmatmul.mubr.bf16.vlgmr.msra.gmra.mrb[16].mxu0 %v1352_v28 }
 0xa2b   : > { %v1458_v30 = vpop.f32.mrb[16].mxu0 }
 0xa2c   : > { %v1459_v31 = vadd.f32 %v1590_v29, %v1458_v30  ;;  %v1740_v32 = vpop.f32.mrb[17].mxu0 }
 0xa2d   : > { %v1461_v33 = vpop.f32.mrb[18].mxu0 }
 0xa2e   : > { %v1464_v34 = vadd.f32 %v1459_v31, %v2234_v45  ;;  %v1741_v35 = vpop.f32.mrb[19].mxu0 }
 0xa30   : > { %1465 = vst.msk [vmem:[%s452_s24] sm:$0xff] %vm465_vm0, %v1464_v34 }
 0xa31   : > { %1878 = shalt.err (!%p1875_p10)
}
 0xa32   : > { %s1879_s15 = scalar_lea.hbm %s2297_s1, 128  ;;  %s1883_s25 = scalar_lea.hbm %s2359_s14, 256 }
 0xa33   : > { %p1880_p11 = scmp.ne.s32.totalorder %s2297_s1, %s1879_s15  ;;  %p1884_p1 = scmp.lt.u32.totalorder %s2297_s1, %s2359_s14 }
 0xa34   : > { %p1885_p2 = scmp.lt.u32.totalorder %s1883_s25, %s1879_s15  ;;  %p1887_p4 = scmp.lt.u32.totalorder %s1879_s15, %s2297_s1 }
 0xa35   : > { %p1881_p12 = pnand %p1880_p11, %p2080_p9 }
 0xa36   : > { %p1886_p3 = por %p1885_p2, %p1884_p1 }
 0xa37   : > { %p1882_p0 = pneg %p1881_p12 }
 0xa38   : > { %p1888_p5 = por %p1887_p4, %p1886_p3 }
 0xa3a   : > { %p1889_p6 = pnand %p1888_p5, %p1882_p0 }
 0xa3c   : > { %1892 = shalt.err (!%p1889_p6)
}
 0xa3d   : > { %1742 = dma.vmem_to_hbm [thread:$0]  (%p2080_p9), %s2299_s26, 128, %s2297_s1, %s1467_s20  }
 0xa3e PF: > { %p1748_p7 = scmp.ge.s32.totalorder %s1945_s22, 2  ;;  %s1493_s2 = sand.u32 1, %s1925_s18  }
 0xa3f   : > { %s1494_s21 = scalar_lea.sflag [#allocation10], %s1493_s2 }
 0xa40   : > { %p1745_p8 = pnand %p1748_p7, %p2087_p13 }
 0xa42   : > { %1920 = dma.done.wait (!%p1745_p8), %s1494_s21, 128  }
 0xa43   : > { %1922 = vsyncadd (!%p1745_p8), %s1494_s21, 4294967168  ;;  %s33_s22 = sadd.s32 1, %s1945_s22   ;;  %s2370_s20 = sld [smem:[#allocation13_spill]] }
 0xa44   : > { %p30_p10 = scmp.ge.s32.totalorder %s33_s22, 4   ;;  %s2371_s21 = sld [smem:[#allocation14_spill]] }
 0xa45   : > { %s2372_s18 = smov %s1929_s19  ;;  %s2373_s19 = smov %s1933_s0 }
 0xa46   : > { %s2374_s0 = smov %s2093_s30  ;;  %32 = sbr.rel (!%p30_p10) target bundleno = 20 (0x14), region = 122 }
 0xa4d   :  { %1499 = vsyncpa [#allocation10], 1 }
 0xa4e   :  { %1501 = vsyncpa [#allocation10 + $0x1], 1 }

</bundles_post_ra>
